<compile_context>
chip_gen: v7x
topology: tpu7x:2x2x1
jax: 0.10.0
libtpu: 0.0.40
codegen_flags: <defaults>
</compile_context>

<pallas_src>
import jax
import jax.numpy as jnp
from jax import lax
from jax.experimental import pallas as pl
from jax.experimental.pallas import tpu as pltpu


def _round_up(x, m):
    return ((x + m - 1) // m) * m


# ---------------------------------------------------------------------------
# Pallas kernel: low-rank reconstruction, row normalization and scaling, all
# pre-folded into A, so the body is a single MXU dot:
#     out_tile = A_tile @ P_tile^T
# (contract the padded rank axis of both operands -> no in-kernel transpose).
# ---------------------------------------------------------------------------
def _lowrank_recon_body(a_ref, p_ref, o_ref):
    o_ref[...] = lax.dot_general(
        a_ref[...], p_ref[...],
        dimension_numbers=(((1,), (1,)), ((), ())),
        preferred_element_type=jnp.float32,
    ).astype(o_ref.dtype)


def _lowrank_reconstruct(a, p, *, out_dtype=jnp.float32,
                         tm_target=512, tn_target=1024):
    n, qp = a.shape
    # Fixed (8,128)-aligned tiles; pl.cdiv grid lets Pallas mask edge blocks, so no
    # full-extent fallback and no masked partial stores on interior tiles.
    tm = min(tm_target, _round_up(n, 8))
    tn = min(tn_target, _round_up(n, 128))
    grid = (pl.cdiv(n, tm), pl.cdiv(n, tn))
    out_bytes = n * n * jnp.dtype(out_dtype).itemsize
    return pl.pallas_call(
        _lowrank_recon_body,
        out_shape=jax.ShapeDtypeStruct((n, n), out_dtype),
        grid_spec=pltpu.PrefetchScalarGridSpec(
            num_scalar_prefetch=0,
            grid=grid,
            in_specs=[
                pl.BlockSpec((tm, qp), lambda i, j: (i, 0)),
                # NOTE: P tile is re-fetched per column step; at qp/tm ~ 2-3% of the
                # output store traffic this is noise for a store-bound kernel.
                pl.BlockSpec((tn, qp), lambda i, j: (j, 0)),
            ],
            out_specs=pl.BlockSpec((tm, tn), lambda i, j: (i, j)),
        ),
        compiler_params=pltpu.CompilerParams(
            dimension_semantics=("parallel", "parallel")),
        cost_estimate=pl.CostEstimate(
            flops=2 * n * n * qp,
            transcendentals=0,
            bytes_accessed=out_bytes + 2 * n * qp * 4),
    )(a, p)


# ---------------------------------------------------------------------------
# ScaledKernel(LowRankKernel(linear base), scalar).forward equivalent.
# ---------------------------------------------------------------------------
def scaled_low_rank_kernel_forward(x, scalar=1.0, q=10, *, normalize=True,
                                   eps=0.0, out_dtype=jnp.float32):
    x = jnp.asarray(x, jnp.float32)
    n, d = x.shape
    q_eff = min(q, n)                       # LowRankKernel: min(q, min(K.shape)), K is (n, n)

    # ---- Gram-trick factorization (plain-JAX glue; D x D, negligible) ----
    g = x.T @ x                             # (d, d)
    _, v = jnp.linalg.eigh(g)               # ascending eigenvalues
    v = v[:, ::-1]                          # descending
    q_used = min(q_eff, d)                  # components beyond rank(K) <= d are exactly zero
    p = x @ v[:, :q_used]                   # (n, q_used); K_q = P @ P^T

    # Zero-pad the rank axis to a multiple of 8 (f32 sublane); zero columns are inert.
    qp = max(8, _round_up(q_used, 8))
    if qp != q_used:
        p = jnp.pad(p, ((0, 0), (0, qp - q_used)))

    # ---- fold scalar + row normalization into the LHS (O(N*q) preamble) ----
    if normalize:
        row_sums = p @ jnp.sum(p, axis=0)   # (n,) == (P P^T) @ 1, algebraic row sums
        a = (scalar / (row_sums + eps))[:, None] * p
    else:
        a = scalar * p

    return _lowrank_reconstruct(a.astype(jnp.float32), p.astype(jnp.float32),
                                out_dtype=out_dtype)


if __name__ == "__main__":
    key = jax.random.PRNGKey(0)
    N, D, Q = 768, 32, 8
    SCALAR = 1.5
    # Positive features -> strictly positive K and well-conditioned row sums
    # (KernelConfig defaults eps to 0.0, so the normalization divide must be well posed).
    x = jax.random.uniform(key, (N, D), dtype=jnp.float32) + 0.1

    out = scaled_low_rank_kernel_forward(x, scalar=SCALAR, q=Q,
                                         normalize=True, eps=0.0)
    out = jax.block_until_ready(out)

    # Plain-JAX reference following the torch module literally: materialize K, full
    # N x N eigendecomposition (== SVD for PSD K), materialized low-rank matrix and
    # materialized row sums, then scale.
    k = x @ x.T
    w, vecs = jnp.linalg.eigh(k)            # ascending
    w = w[::-1]
    vecs = vecs[:, ::-1]
    lr = (vecs[:, :Q] * w[:Q][None, :]) @ vecs[:, :Q].T
    lr = lr / (jnp.sum(lr, axis=1, keepdims=True) + 0.0)
    ref = SCALAR * lr

    assert out.shape == (N, N)
    err = float(jnp.max(jnp.abs(out - ref)))
    assert jnp.allclose(out, ref, rtol=1e-2, atol=1e-4), err

    print("KERNEL_OK")
</pallas_src>

<mosaic_0001>
module attributes {stable_mosaic.version = 11 : i64} {
  func.func @_lowrank_recon_body(%arg0: i32, %arg1: i32, %arg2: memref<512x8xf32, #tpu.memory_space<vmem>>, %arg3: memref<768x8xf32, #tpu.memory_space<vmem>>, %arg4: memref<512x768xf32, #tpu.memory_space<vmem>>) attributes {dimension_semantics = [#tpu.dimension_semantics<parallel>, #tpu.dimension_semantics<parallel>], iteration_bounds = array<i64: 2, 1>, scalar_prefetch = 0 : i64, scratch_operands = 0 : i64, tpu.core_type = #tpu.core_type<tc>, window_params = [{transform_indices = @transform_0, window_bounds = array<i64: 512, 8>}, {transform_indices = @transform_1, window_bounds = array<i64: 768, 8>}, {transform_indices = @transform_2, window_bounds = array<i64: 512, 768>}]} {
    %c0 = arith.constant 0 : index
    %c0_0 = arith.constant 0 : index
    %0 = vector.load %arg2[%c0, %c0_0] : memref<512x8xf32, #tpu.memory_space<vmem>>, vector<512x8xf32>
    %c0_1 = arith.constant 0 : index
    %c0_2 = arith.constant 0 : index
    %1 = vector.load %arg3[%c0_1, %c0_2] : memref<768x8xf32, #tpu.memory_space<vmem>>, vector<768x8xf32>
    %cst = arith.constant dense<0.000000e+00> : vector<512x768xf32>
    %2 = tpu.matmul %0, %1, %cst {dimension_numbers = #tpu.dot_dimension_numbers<[1], [1], [0], [0], [0, 0, 1, 0], [], []>} : vector<512x8xf32>, vector<768x8xf32>, vector<512x768xf32> -> vector<512x768xf32>
    %c0_3 = arith.constant 0 : index
    %c0_4 = arith.constant 0 : index
    %3 = vector.load %arg4[%c0_3, %c0_4] : memref<512x768xf32, #tpu.memory_space<vmem>>, vector<512x768xf32>
    tpu.vector_store %arg4[%c0_3, %c0_4], %2 {strides = array<i32>} : memref<512x768xf32, #tpu.memory_space<vmem>>, vector<512x768xf32>,
    return
  }
  func.func @transform_0(%arg0: i32, %arg1: i32) -> (i32, i32) {
    %c0_i32 = arith.constant 0 : i32
    %c0_i32_0 = arith.constant 0 : i32
    return %arg0, %c0_i32 : i32, i32
  }
  func.func @transform_1(%arg0: i32, %arg1: i32) -> (i32, i32) {
    %c0_i32 = arith.constant 0 : i32
    %c0_i32_0 = arith.constant 0 : i32
    return %arg1, %c0_i32 : i32, i32
  }
  func.func @transform_2(%arg0: i32, %arg1: i32) -> (i32, i32) {
    %c0_i32 = arith.constant 0 : i32
    return %arg0, %arg1 : i32, i32
  }
}

</mosaic_0001>

<bundles_post_ra>
// kernel: tpu_custom_call.1
= control target key start
LH: loop header
LB: loop body
LE: loop exit
PB: predicated region body
PF: predicated region fallthrough
CT: control target
= control target key end

     0   :  { %7 = vsyncpa [#allocation3], 0  ;;  %s5538_s0 = inlined_call_operand.vmem [shape: f32[768,8], index: 0, kind: input, shape index: {}]   ;;  %s5539_s1 = inlined_call_operand.vmem [shape: f32[768,8], index: 1, kind: input, shape index: {}]   ;;  %s5540_s2 = inlined_call_operand.hbm [shape: f32[768,768], index: 2, kind: output, shape index: {}]  }
   0x1   :  { %9 = vsyncpa [#allocation3 + $0x1], 0  ;;  %s3824_s9 = smov 0   ;;  %s3826_s10 = smov 0  }
   0x2   :  { %s3828_s11 = smov 0   ;;  %s3830_s12 = smov 0  }
   0x3   :  { %s3832_s13 = smov 0   ;;  %s3834_s14 = smov 0  }
   0x4 LB: > { %s2691_s15 = sadd.s32 4294967295, %s3804_s14   ;;  %s2692_s16 = sadd.s32 4294967294, %s3804_s14   ;;  %s3804_s14 = sphi %s3834_s14, %s15_s14   ;;  %s3800_s13 = sphi %s3832_s13, %s5549_s13   ;;  %s3796_s12 = sphi %s3830_s12, %s5548_s12   ;;  %s3792_s11 = sphi %s3828_s11, %s5547_s11   ;;  %s3788_s10 = sphi %s3826_s10, %s5546_s10   ;;  %s3784_s9 = sphi %s3824_s9, %s5545_s9  }
   0x5   : > { %s27_s17 = sadd.s32 1, %s3800_s13  ;;  %s88_s18 = sadd.s32 1, %s3792_s11 }
   0x6   : > { %p29_p0 = scmp.ge.s32.totalorder %s27_s17, 2  ;;  %p98_p1 = scmp.ne.s32.totalorder %s3792_s11, %s3788_s10 }
   0x7   : > { %p99_p2 = scmp.eq.s32.totalorder %s2691_s15, 1  ;;  %p104_p3 = scmp.ne.s32.totalorder %s3788_s10, %s3784_s9 }
   0x8   : > { %s5551_s17 = smov (%p29_p0, %s27_s17), 0  ;;  %p105_p5 = scmp.eq.s32.totalorder %s2692_s16, 1 }
   0x9   : > { %p3864_p4 = por %p99_p2, %p98_p1  ;;  %s83_s20 = ssub.s32 %s3800_s13, %s5551_s17 }
   0xa   : > { %p2696_p6 = scmp.ge.s32.totalorder %s3804_s14, 1  ;;  %p86_p7 = scmp.eq.s32.totalorder %s83_s20, 0 }
   0xb   : > { %p3871_p8 = por %p105_p5, %p104_p3  ;;  %p149_p9 = scmp.lt.s32.totalorder %s3804_s14, 3 }
   0xc   : > { %s3877_s22 = scalar_select %p86_p7, %s3792_s11, %s88_s18  }
   0xd   : > { %p150_p10 = pnand %p2696_p6, %p149_p9 }
   0xe   : > { %v287_v0 = vld [vmem:[%s5539_s1 + $0x80] sm:$0xff] (!%p150_p10)  ;;  %v288_v1 = vld [vmem:[%s5539_s1 + $0x88] sm:$0xff] (!%p150_p10)  ;;  %vm367_vm0 = vcmask (!%p150_p10), 64512   ;;  %s3889_s29 = sshll.u32 (!%p150_p10), %s3796_s12, 6  ;;  %v289_v6 = vld [vmem:[%s5539_s1 + $0x90] sm:$0xff] (!%p150_p10)  ;;  %s177_s26 = sand.u32 (!%p150_p10), 1, %s3788_s10  }
   0xf   : > { %153 = sbr.rel (%p150_p10) target bundleno = 704 (0x2c0), region = 28  ;;  %v271_v2 = vld [vmem:[%s5539_s1] sm:$0xff] (!%p150_p10)  ;;  %v3476_v3 = vpack.c.bf16 (!%p150_p10), %v288_v1, %v287_v0  ;;  %vm3893_vm1 = vmpackc.low (!%p150_p10), %vm367_vm0, %vm367_vm0  ;;  %v272_v5 = vld [vmem:[%s5539_s1 + $0x8] sm:$0xff] (!%p150_p10)  ;;  %p185_p11 = scmp.lt.s32.totalorder (!%p150_p10), %s3889_s29, 95 }
  0x10   : > { %v3479_v7 = vpack.c.bf16 (!%p150_p10), %v272_v5, %v271_v2  ;;  %v290_v8 = vld [vmem:[%s5539_s1 + $0x98] sm:$0xff] (!%p150_p10)  ;;  %v273_v10 = vld [vmem:[%s5539_s1 + $0x10] sm:$0xff] (!%p150_p10)  ;;  %v291_v12 = vld [vmem:[%s5539_s1 + $0xa0] sm:$0xff] (!%p150_p10)  ;;  %s3636_s27 = smul.u32 (!%p150_p10), 3072, %s177_s26 }
  0x11   : > { %3478 = vmatprep.subr.msk.bf16.mxu0 (!%p150_p10), %vm3893_vm1, %v3476_v3  ;;  %3620 = vmatprep.subr.msk.bf16.mxu1 (!%p150_p10), %vm3893_vm1, %v3476_v3  ;;  %v3482_v9 = vpack.c.bf16 (!%p150_p10), %v290_v8, %v289_v6  ;;  %v274_v11 = vld [vmem:[%s5539_s1 + $0x18] sm:$0xff] (!%p150_p10)  ;;  %v292_v13 = vld [vmem:[%s5539_s1 + $0xa8] sm:$0xff] (!%p150_p10)  ;;  %v275_v18 = vld [vmem:[%s5539_s1 + $0x20] sm:$0xff] (!%p150_p10) }
  0x12   : > { %3481 = vmatpush3.bf16.xpose.msk.msra.mxu0 (!%p150_p10), %vm3893_vm1, %v3479_v7  ;;  %3628 = vmatpush3.bf16.xpose.msk.msra.mxu1 (!%p150_p10), %vm3893_vm1, %v3479_v7  ;;  %v3485_v14 = vpack.c.bf16 (!%p150_p10), %v274_v11, %v273_v10  ;;  %v3488_v15 = vpack.c.bf16 (!%p150_p10), %v292_v13, %v291_v12  ;;  %v276_v19 = vld [vmem:[%s5539_s1 + $0x28] sm:$0xff] (!%p150_p10)  ;;  %v293_v20 = vld [vmem:[%s5539_s1 + $0xb0] sm:$0xff] (!%p150_p10)  ;;  %v294_v21 = vld [vmem:[%s5539_s1 + $0xb8] sm:$0xff] (!%p150_p10)  ;;  %s4830_s28 = scalar_lea.vmem (!%p150_p10), [#allocation2], %s3636_s27 }
  0x13   : > { %3484 = vmatprep.subr.msk.bf16.mxu0 (!%p150_p10), %vm3893_vm1, %v3482_v9  ;;  %3621 = vmatprep.subr.msk.bf16.mxu1 (!%p150_p10), %vm3893_vm1, %v3482_v9  ;;  %v3491_v22 = vpack.c.bf16 (!%p150_p10), %v276_v19, %v275_v18  ;;  %v3494_v23 = vpack.c.bf16 (!%p150_p10), %v294_v21, %v293_v20  ;;  %v277_v24 = vld [vmem:[%s5539_s1 + $0x30] sm:$0xff] (!%p150_p10)  ;;  %v278_v25 = vld [vmem:[%s5539_s1 + $0x38] sm:$0xff] (!%p150_p10)  ;;  %v295_v26 = vld [vmem:[%s5539_s1 + $0xc0] sm:$0xff] (!%p150_p10) }
  0x14   : > { %v296_v27 = vld [vmem:[%s5539_s1 + $0xc8] sm:$0xff] (!%p150_p10)  ;;  %v3497_v28 = vpack.c.bf16 (!%p150_p10), %v278_v25, %v277_v24  ;;  %v279_v30 = vld [vmem:[%s5539_s1 + $0x40] sm:$0xff] (!%p150_p10)  ;;  %v297_v32 = vld [vmem:[%s5539_s1 + $0xd0] sm:$0xff] (!%p150_p10) }
  0x15   : > { %v3500_v29 = vpack.c.bf16 (!%p150_p10), %v296_v27, %v295_v26  ;;  %v280_v31 = vld [vmem:[%s5539_s1 + $0x48] sm:$0xff] (!%p150_p10)  ;;  %v298_v33 = vld [vmem:[%s5539_s1 + $0xd8] sm:$0xff] (!%p150_p10)  ;;  %v281_v36 = vld [vmem:[%s5539_s1 + $0x50] sm:$0xff] (!%p150_p10) }
  0x16   : > { %s186_s8 = scalar_select %p185_p11, %s3889_s29, 95  ;;  %v3503_v34 = vpack.c.bf16 %v280_v31, %v279_v30  ;;  %v3506_v35 = vpack.c.bf16 %v298_v33, %v297_v32  ;;  %v282_v37 = vld [vmem:[%s5539_s1 + $0x58] sm:$0xff]  ;;  %v299_v38 = vld [vmem:[%s5539_s1 + $0xe0] sm:$0xff]  ;;  %v300_v39 = vld [vmem:[%s5539_s1 + $0xe8] sm:$0xff] }
  0x17   : > { %v3509_v40 = vpack.c.bf16 %v282_v37, %v281_v36  ;;  %v3512_v41 = vpack.c.bf16 %v300_v39, %v299_v38  ;;  %v283_v42 = vld [vmem:[%s5539_s1 + $0x60] sm:$0xff]  ;;  %v284_v43 = vld [vmem:[%s5539_s1 + $0x68] sm:$0xff]  ;;  %v301_v44 = vld [vmem:[%s5539_s1 + $0xf0] sm:$0xff]  ;;  %s2589_s30 = ssub.s32 (%p3864_p4), 96, %s3889_s29 }
  0x18   : > { %s2698_s23 = sshll.u32 %s186_s8, 3  ;;  %v302_v45 = vld [vmem:[%s5539_s1 + $0xf8] sm:$0xff]  ;;  %v3515_v46 = vpack.c.bf16 %v284_v43, %v283_v42  ;;  %v285_v48 = vld [vmem:[%s5539_s1 + $0x70] sm:$0xff]  ;;  %v319_v50 = vld [vmem:[%s5539_s1 + $0x180] sm:$0xff]  ;;  %p2590_p12 = scmp.lt.s32.totalorder (%p3864_p4), %s2589_s30, 64 }
  0x19   : > { %s3935_s3 = scalar_lea.vmem %s5538_s0, %s2698_s23  ;;  %v3518_v47 = vpack.c.bf16 %v302_v45, %v301_v44  ;;  %v286_v49 = vld [vmem:[%s5539_s1 + $0x78] sm:$0xff]  ;;  %v320_v51 = vld [vmem:[%s5539_s1 + $0x188] sm:$0xff]  ;;  %v351_v52 = vld [vmem:[%s5539_s1 + $0x280] sm:$0xff] }
  0x1a   : > { %v3938_v16 = vld [vmem:[%s3935_s3] sm:$0xff]  ;;  %3487 = vmatpush3.bf16.xpose.msk.msra.mxu0 %vm3893_vm1, %v3485_v14  ;;  %3629 = vmatpush3.bf16.xpose.msk.msra.mxu1 %vm3893_vm1, %v3485_v14  ;;  %v352_v53 = vld [vmem:[%s5539_s1 + $0x288] sm:$0xff]  ;;  %v3521_v54 = vpack.c.bf16 %v286_v49, %v285_v48  ;;  %v3524_v55 = vpack.c.bf16 %v320_v51, %v319_v50  ;;  %v321_v61 = vld [vmem:[%s5539_s1 + $0x190] sm:$0xff] }
  0x1b   : > { %v3941_v17 = vld [vmem:[%s3935_s3 + $0x100] sm:$0xff]  ;;  %3490 = vmatprep.subr.msk.bf16.mxu0 %vm3893_vm1, %v3488_v15  ;;  %3622 = vmatprep.subr.msk.bf16.mxu1 %vm3893_vm1, %v3488_v15  ;;  %v3572_v56 = vpack.c.bf16 %v352_v53, %v351_v52  ;;  %v304_v58 = vld [vmem:[%s5539_s1 + $0x108] sm:$0xff]  ;;  %v322_v62 = vld [vmem:[%s5539_s1 + $0x198] sm:$0xff] }
  0x1c   : > { %3028 = vmatprep.mubr.msk.f32.mxu0 %vm367_vm0, %v3938_v16  ;;  %3092 = vmatprep.mubr.msk.f32.mxu1 %vm367_vm0, %v3941_v17  ;;  %v303_v57 = vld [vmem:[%s5539_s1 + $0x100] sm:$0xff]  ;;  %v336_v60 = vld [vmem:[%s5539_s1 + $0x208] sm:$0xff]  ;;  %v353_v63 = vld [vmem:[%s5539_s1 + $0x290] sm:$0xff]  ;;  %v3530_v6 = vpack.c.bf16 %v322_v62, %v321_v61 }
  0x1d   : > { %v335_v59 = vld [vmem:[%s5539_s1 + $0x200] sm:$0xff]  ;;  %v354_v0 = vld [vmem:[%s5539_s1 + $0x298] sm:$0xff]  ;;  %v3527_v1 = vpack.c.bf16 %v304_v58, %v303_v57  ;;  %v4106_v3 = vld [vmem:[%s3935_s3 + $0x8] sm:$0xff] }
  0x1e   : > { %v3575_v2 = vpack.c.bf16 %v336_v60, %v335_v59  ;;  %v240_v5 = vld [vmem:[%s3935_s3 + $0x108] sm:$0xff]  ;;  %v3578_v7 = vpack.c.bf16 %v354_v0, %v353_v63  ;;  %v4118_v8 = vld [vmem:[%s3935_s3 + $0x10] sm:$0xff]  ;;  %v306_v11 = vld [vmem:[%s5539_s1 + $0x118] sm:$0xff] }
  0x1f   : > { %v241_v9 = vld [vmem:[%s3935_s3 + $0x110] sm:$0xff]  ;;  %v338_v13 = vld [vmem:[%s5539_s1 + $0x218] sm:$0xff]  ;;  %v323_v14 = vld [vmem:[%s5539_s1 + $0x1a0] sm:$0xff] }
  0x20   : > { %v305_v10 = vld [vmem:[%s5539_s1 + $0x110] sm:$0xff]  ;;  %v324_v15 = vld [vmem:[%s5539_s1 + $0x1a8] sm:$0xff]  ;;  %v4159_v19 = vld [vmem:[%s3935_s3 + $0x18] sm:$0xff] }
  0x21   : > { %v337_v12 = vld [vmem:[%s5539_s1 + $0x210] sm:$0xff]  ;;  %v356_v18 = vld [vmem:[%s5539_s1 + $0x2a8] sm:$0xff]  ;;  %v242_v20 = vld [vmem:[%s3935_s3 + $0x118] sm:$0xff]  ;;  %v3533_v21 = vpack.c.bf16 %v306_v11, %v305_v10 }
  0x22   : > { %3493 = vmatpush3.bf16.xpose.msk.msra.mxu0 %vm3893_vm1, %v3491_v22  ;;  %3630 = vmatpush3.bf16.xpose.msk.msra.mxu1 %vm3893_vm1, %v3491_v22  ;;  %v3581_v22 = vpack.c.bf16 %v338_v13, %v337_v12  ;;  %v4169_v25 = vld [vmem:[%s3935_s3 + $0x20] sm:$0xff]  ;;  %v340_v30 = vld [vmem:[%s5539_s1 + $0x228] sm:$0xff]  ;;  %v325_v31 = vld [vmem:[%s5539_s1 + $0x1b0] sm:$0xff] }
  0x23   : > { %3496 = vmatprep.subr.msk.bf16.mxu0 %vm3893_vm1, %v3494_v23  ;;  %3623 = vmatprep.subr.msk.bf16.mxu1 %vm3893_vm1, %v3494_v23  ;;  %v3536_v23 = vpack.c.bf16 %v324_v15, %v323_v14  ;;  %v243_v26 = vld [vmem:[%s3935_s3 + $0x120] sm:$0xff]  ;;  %v326_v32 = vld [vmem:[%s5539_s1 + $0x1b8] sm:$0xff]  ;;  %v357_v33 = vld [vmem:[%s5539_s1 + $0x2b0] sm:$0xff] }
  0x24   : > { %v307_v27 = vld [vmem:[%s5539_s1 + $0x120] sm:$0xff]  ;;  %v244_v36 = vld [vmem:[%s3935_s3 + $0x128] sm:$0xff]  ;;  %v3542_v39 = vpack.c.bf16 %v326_v32, %v325_v31  ;;  %v245_v42 = vld [vmem:[%s3935_s3 + $0x130] sm:$0xff] }
  0x25   : > { %v309_v43 = vld [vmem:[%s5539_s1 + $0x130] sm:$0xff]  ;;  %v310_v44 = vld [vmem:[%s5539_s1 + $0x138] sm:$0xff]  ;;  %v328_v48 = vld [vmem:[%s5539_s1 + $0x1c8] sm:$0xff] }
  0x26   : > { %v341_v45 = vld [vmem:[%s5539_s1 + $0x230] sm:$0xff]  ;;  %v359_v49 = vld [vmem:[%s5539_s1 + $0x2c0] sm:$0xff]  ;;  %v360_v50 = vld [vmem:[%s5539_s1 + $0x2c8] sm:$0xff]  ;;  %v3545_v53 = vpack.c.bf16 %v310_v44, %v309_v43 }
  0x27   : > { %v4263_v51 = vld [vmem:[%s3935_s3 + $0x38] sm:$0xff]  ;;  %v4273_v57 = vld [vmem:[%s3935_s3 + $0x40] sm:$0xff]  ;;  %v312_v60 = vld [vmem:[%s5539_s1 + $0x148] sm:$0xff] }
  0x28   : > { %v246_v52 = vld [vmem:[%s3935_s3 + $0x138] sm:$0xff]  ;;  %v247_v58 = vld [vmem:[%s3935_s3 + $0x140] sm:$0xff]  ;;  %v344_v62 = vld [vmem:[%s5539_s1 + $0x248] sm:$0xff] }
  0x29   : > { %v311_v59 = vld [vmem:[%s5539_s1 + $0x140] sm:$0xff]  ;;  %v329_v63 = vld [vmem:[%s5539_s1 + $0x1d0] sm:$0xff]  ;;  %v330_v0 = vld [vmem:[%s5539_s1 + $0x1d8] sm:$0xff] }
  0x2a   : > { %3499 = vmatpush3.bf16.xpose.msk.msra.mxu0 %vm3893_vm1, %v3497_v28  ;;  %3631 = vmatpush3.bf16.xpose.msk.msra.mxu1 %vm3893_vm1, %v3497_v28  ;;  %v308_v28 = vld [vmem:[%s5539_s1 + $0x128] sm:$0xff]  ;;  %v343_v61 = vld [vmem:[%s5539_s1 + $0x240] sm:$0xff]  ;;  %v3554_v10 = vpack.c.bf16 %v330_v0, %v329_v63  ;;  %v4325_v12 = vld [vmem:[%s3935_s3 + $0x50] sm:$0xff] }
  0x2b   : > { %3502 = vmatprep.subr.msk.bf16.mxu0 %vm3893_vm1, %v3500_v29  ;;  %3624 = vmatprep.subr.msk.bf16.mxu1 %vm3893_vm1, %v3500_v29  ;;  %v339_v29 = vld [vmem:[%s5539_s1 + $0x220] sm:$0xff]  ;;  %v3539_v37 = vpack.c.bf16 %v308_v28, %v307_v27  ;;  %v249_v13 = vld [vmem:[%s3935_s3 + $0x150] sm:$0xff]  ;;  %v314_v15 = vld [vmem:[%s5539_s1 + $0x158] sm:$0xff] }
  0x2c   : > { %v3587_v38 = vpack.c.bf16 %v340_v30, %v339_v29  ;;  %v313_v14 = vld [vmem:[%s5539_s1 + $0x150] sm:$0xff]  ;;  %v4380_v31 = vld [vmem:[%s3935_s3 + $0x60] sm:$0xff]  ;;  %v4423_v43 = vld [vmem:[%s3935_s3 + $0x68] sm:$0xff] }
  0x2d   : > { %v3557_v27 = vpack.c.bf16 %v314_v15, %v313_v14  ;;  %v251_v32 = vld [vmem:[%s3935_s3 + $0x160] sm:$0xff]  ;;  %v4426_v44 = vld [vmem:[%s3935_s3 + $0x168] sm:$0xff]  ;;  %v4513_v4 = vld [vmem:[%s3935_s3 + $0x90] sm:$0xff] }
  0x2e   : > { %v4502_v63 = vld [vmem:[%s3935_s3 + $0x88] sm:$0xff]  ;;  %v261_v14 = vld [vmem:[%s3935_s3 + $0x1b0] sm:$0xff]  ;;  %v4563_v15 = vld [vmem:[%s3935_s3 + $0xb8] sm:$0xff] }
  0x2f   : > { %v256_v0 = vld [vmem:[%s3935_s3 + $0x188] sm:$0xff] }
  0x32   : > { %3505 = vmatpush3.bf16.xpose.msk.msra.mxu0 %vm3893_vm1, %v3503_v34  ;;  %3632 = vmatpush3.bf16.xpose.msk.msra.mxu1 %vm3893_vm1, %v3503_v34  ;;  %v358_v34 = vld [vmem:[%s5539_s1 + $0x2b8] sm:$0xff] }
  0x33   : > { %3508 = vmatprep.subr.msk.bf16.mxu0 %vm3893_vm1, %v3506_v35  ;;  %3625 = vmatprep.subr.msk.bf16.mxu1 %vm3893_vm1, %v3506_v35  ;;  %v4211_v35 = vld [vmem:[%s3935_s3 + $0x28] sm:$0xff] }
  0x3a   : > { %3511 = vmatpush3.bf16.xpose.msk.msra.mxu0 %vm3893_vm1, %v3509_v40  ;;  %3633 = vmatpush3.bf16.xpose.msk.msra.mxu1 %vm3893_vm1, %v3509_v40  ;;  %v3590_v40 = vpack.c.bf16 %v358_v34, %v357_v33  ;;  %v315_v33 = vld [vmem:[%s5539_s1 + $0x160] sm:$0xff]  ;;  %v316_v34 = vld [vmem:[%s5539_s1 + $0x168] sm:$0xff] }
  0x3b   : > { %3514 = vmatprep.subr.msk.bf16.mxu0 %vm3893_vm1, %v3512_v41  ;;  %3626 = vmatprep.subr.msk.bf16.mxu1 %vm3893_vm1, %v3512_v41  ;;  %v4221_v41 = vld [vmem:[%s3935_s3 + $0x30] sm:$0xff] }
  0x42   : > { %3517 = vmatpush3.bf16.xpose.msk.msra.mxu0 %vm3893_vm1, %v3515_v46  ;;  %3634 = vmatpush3.bf16.xpose.msk.msra.mxu1 %vm3893_vm1, %v3515_v46  ;;  %v342_v46 = vld [vmem:[%s5539_s1 + $0x238] sm:$0xff] }
  0x43   : > { %3520 = vmatprep.subr.msk.bf16.mxu0 %vm3893_vm1, %v3518_v47  ;;  %3627 = vmatprep.subr.msk.bf16.mxu1 %vm3893_vm1, %v3518_v47  ;;  %v327_v47 = vld [vmem:[%s5539_s1 + $0x1c0] sm:$0xff] }
  0x4a   : > { %3523 = vmatpush3.bf16.xpose.msk.msra.mxu0 %vm3893_vm1, %v3521_v54  ;;  %3635 = vmatpush3.bf16.xpose.msk.msra.mxu1 %vm3893_vm1, %v3521_v54  ;;  %v3593_v54 = vpack.c.bf16 %v342_v46, %v341_v45  ;;  %v3563_v45 = vpack.c.bf16 %v316_v34, %v315_v33  ;;  %v4623_v33 = vld [vmem:[%s3935_s3 + $0xe8] sm:$0xff] }
  0x4b   : > { %3526 = vmatprep.subr.msk.bf16.mxu1 %vm3893_vm1, %v3524_v55  ;;  %3574 = vmatprep.subr.msk.bf16.mxu0 %vm3893_vm1, %v3572_v56  ;;  %v3548_v55 = vpack.c.bf16 %v328_v48, %v327_v47  ;;  %v3596_v56 = vpack.c.bf16 %v360_v50, %v359_v49  ;;  %v4436_v49 = vld [vmem:[%s3935_s3 + $0x70] sm:$0xff]  ;;  %v268_v34 = vld [vmem:[%s3935_s3 + $0x1e8] sm:$0xff] }
  0x4c   : > { %v4439_v50 = vld [vmem:[%s3935_s3 + $0x170] sm:$0xff] }
  0x51   : > { %3029 = vmatmul.mubr.msk.f32.vlgmr.msra.gmra.mrb[0].mxu0 %vm367_vm0, %v3938_v16  ;;  %3093 = vmatmul.mubr.msk.f32.vlgmr.msra.gmra.mrb[0].mxu1 %vm367_vm0, %v3941_v17  ;;  %v355_v17 = vld [vmem:[%s5539_s1 + $0x2a0] sm:$0xff] }
  0x52   : > { %3529 = vmatpush3.bf16.xpose.msk.msra.mxu1 %vm3893_vm1, %v3527_v1  ;;  %3577 = vmatpush3.bf16.xpose.msk.msra.mxu0 %vm3893_vm1, %v3575_v2  ;;  %v3584_v24 = vpack.c.bf16 %v356_v18, %v355_v17  ;;  %v361_v1 = vld [vmem:[%s5539_s1 + $0x2d0] sm:$0xff]  ;;  %v362_v2 = vld [vmem:[%s5539_s1 + $0x2d8] sm:$0xff] }
  0x53   : > { %3030 = vmatprep.mubr.msk.f32.mxu0 %vm367_vm0, %v4106_v3  ;;  %3094 = vmatprep.mubr.msk.f32.mxu1 %vm367_vm0, %v240_v5  ;;  %v3602_v11 = vpack.c.bf16 %v362_v2, %v361_v1  ;;  %v345_v17 = vld [vmem:[%s5539_s1 + $0x250] sm:$0xff]  ;;  %v346_v18 = vld [vmem:[%s5539_s1 + $0x258] sm:$0xff] }
  0x54   : > { %3532 = vmatprep.subr.msk.bf16.mxu1 %vm3893_vm1, %v3530_v6  ;;  %3580 = vmatprep.subr.msk.bf16.mxu0 %vm3893_vm1, %v3578_v7  ;;  %v248_v6 = vld [vmem:[%s3935_s3 + $0x148] sm:$0xff]  ;;  %v3551_v7 = vpack.c.bf16 %v312_v60, %v311_v59  ;;  %v3605_v28 = vpack.c.bf16 %v346_v18, %v345_v17  ;;  %v257_v1 = vld [vmem:[%s3935_s3 + $0x190] sm:$0xff]  ;;  %v4523_v2 = vld [vmem:[%s3935_s3 + $0x98] sm:$0xff] }
  0x55   : > { %3031 = vmatmul.mubr.msk.f32.gmra.mrb[2].mxu0 %vm367_vm0, %v4106_v3  ;;  %3095 = vmatmul.mubr.msk.f32.gmra.mrb[2].mxu1 %vm367_vm0, %v240_v5  ;;  %v4315_v5 = vld [vmem:[%s3935_s3 + $0x48] sm:$0xff]  ;;  %v262_v17 = vld [vmem:[%s3935_s3 + $0x1b8] sm:$0xff]  ;;  %v4573_v18 = vld [vmem:[%s3935_s3 + $0xc0] sm:$0xff] }
  0x56   : > { %3032 = vmatprep.mubr.msk.f32.mxu0 %vm367_vm0, %v4118_v8  ;;  %3096 = vmatprep.mubr.msk.f32.mxu1 %vm367_vm0, %v241_v9 }
  0x59   : > { %3033 = vmatmul.mubr.msk.f32.gmra.mrb[4].mxu0 %vm367_vm0, %v4118_v8  ;;  %3097 = vmatmul.mubr.msk.f32.gmra.mrb[4].mxu1 %vm367_vm0, %v241_v9  ;;  %v3599_v9 = vpack.c.bf16 %v344_v62, %v343_v61  ;;  %v4484_v61 = vld [vmem:[%s3935_s3 + $0x80] sm:$0xff] }
  0x5a   : > { %3034 = vmatprep.mubr.msk.f32.mxu0 %vm367_vm0, %v4159_v19  ;;  %3098 = vmatprep.mubr.msk.f32.mxu1 %vm367_vm0, %v242_v20  ;;  %v4487_v62 = vld [vmem:[%s3935_s3 + $0x180] sm:$0xff] }
  0x5b   : > { %3535 = vmatpush3.bf16.xpose.msk.msra.mxu1 %vm3893_vm1, %v3533_v21  ;;  %3583 = vmatpush3.bf16.xpose.msk.msra.mxu0 %vm3893_vm1, %v3581_v22  ;;  %v332_v21 = vld [vmem:[%s5539_s1 + $0x1e8] sm:$0xff]  ;;  %v363_v22 = vld [vmem:[%s5539_s1 + $0x2e0] sm:$0xff] }
  0x5c   : > { %3538 = vmatprep.subr.msk.bf16.mxu1 %vm3893_vm1, %v3536_v23  ;;  %3586 = vmatprep.subr.msk.bf16.mxu0 %vm3893_vm1, %v3584_v24  ;;  %v364_v23 = vld [vmem:[%s5539_s1 + $0x2e8] sm:$0xff]  ;;  %v4367_v24 = vld [vmem:[%s3935_s3 + $0x58] sm:$0xff] }
  0x5d   : > { %3035 = vmatmul.mubr.msk.f32.gmra.mrb[6].mxu0 %vm367_vm0, %v4159_v19  ;;  %3099 = vmatmul.mubr.msk.f32.gmra.mrb[6].mxu1 %vm367_vm0, %v242_v20  ;;  %v331_v20 = vld [vmem:[%s5539_s1 + $0x1e0] sm:$0xff]  ;;  %v3608_v30 = vpack.c.bf16 %v364_v23, %v363_v22  ;;  %v264_v22 = vld [vmem:[%s3935_s3 + $0x1c8] sm:$0xff]  ;;  %v4593_v23 = vld [vmem:[%s3935_s3 + $0xd0] sm:$0xff] }
  0x5e   : > { %3036 = vmatprep.mubr.msk.f32.mxu0 %vm367_vm0, %v4169_v25  ;;  %3100 = vmatprep.mubr.msk.f32.mxu1 %vm367_vm0, %v243_v26  ;;  %v3560_v29 = vpack.c.bf16 %v332_v21, %v331_v20  ;;  %v263_v20 = vld [vmem:[%s3935_s3 + $0x1c0] sm:$0xff]  ;;  %v4583_v21 = vld [vmem:[%s3935_s3 + $0xc8] sm:$0xff] }
  0x61   : > { %3037 = vmatmul.mubr.msk.f32.gmra.mrb[8].mxu0 %vm367_vm0, %v4169_v25  ;;  %3101 = vmatmul.mubr.msk.f32.gmra.mrb[8].mxu1 %vm367_vm0, %v243_v26  ;;  %v4370_v26 = vld [vmem:[%s3935_s3 + $0x158] sm:$0xff] }
  0x62   : > { %3038 = vmatprep.mubr.msk.f32.mxu0 %vm367_vm0, %v4211_v35  ;;  %3102 = vmatprep.mubr.msk.f32.mxu1 %vm367_vm0, %v244_v36 }
  0x63   : > { %3541 = vmatpush3.bf16.xpose.msk.msra.mxu1 %vm3893_vm1, %v3539_v37  ;;  %3589 = vmatpush3.bf16.xpose.msk.msra.mxu0 %vm3893_vm1, %v3587_v38  ;;  %v348_v37 = vld [vmem:[%s5539_s1 + $0x268] sm:$0xff]  ;;  %v333_v38 = vld [vmem:[%s5539_s1 + $0x1f0] sm:$0xff] }
  0x64   : > { %3544 = vmatprep.subr.msk.bf16.mxu1 %vm3893_vm1, %v3542_v39  ;;  %3592 = vmatprep.subr.msk.bf16.mxu0 %vm3893_vm1, %v3590_v40  ;;  %v334_v39 = vld [vmem:[%s5539_s1 + $0x1f8] sm:$0xff]  ;;  %v365_v40 = vld [vmem:[%s5539_s1 + $0x2f0] sm:$0xff] }
  0x65   : > { %3039 = vmatmul.mubr.msk.f32.gmra.mrb[10].mxu0 %vm367_vm0, %v4211_v35  ;;  %3103 = vmatmul.mubr.msk.f32.gmra.mrb[10].mxu1 %vm367_vm0, %v244_v36  ;;  %v347_v36 = vld [vmem:[%s5539_s1 + $0x260] sm:$0xff]  ;;  %v3566_v47 = vpack.c.bf16 %v334_v39, %v333_v38  ;;  %v4643_v38 = vld [vmem:[%s3935_s3 + $0xf8] sm:$0xff] }
  0x66   : > { %3040 = vmatprep.mubr.msk.f32.mxu0 %vm367_vm0, %v4221_v41  ;;  %3104 = vmatprep.mubr.msk.f32.mxu1 %vm367_vm0, %v245_v42  ;;  %v3611_v46 = vpack.c.bf16 %v348_v37, %v347_v36  ;;  %v4633_v36 = vld [vmem:[%s3935_s3 + $0xf0] sm:$0xff]  ;;  %v270_v39 = vld [vmem:[%s3935_s3 + $0x1f8] sm:$0xff] }
  0x67   : > { %v269_v37 = vld [vmem:[%s3935_s3 + $0x1f0] sm:$0xff] }
  0x69   : > { %3041 = vmatmul.mubr.msk.f32.gmra.mrb[12].mxu0 %vm367_vm0, %v4221_v41  ;;  %3105 = vmatmul.mubr.msk.f32.gmra.mrb[12].mxu1 %vm367_vm0, %v245_v42  ;;  %v366_v42 = vld [vmem:[%s5539_s1 + $0x2f8] sm:$0xff] }
  0x6a   : > { %3042 = vmatprep.mubr.msk.f32.mxu0 %vm367_vm0, %v4263_v51  ;;  %3106 = vmatprep.mubr.msk.f32.mxu1 %vm367_vm0, %v246_v52  ;;  %v3614_v48 = vpack.c.bf16 %v366_v42, %v365_v40 }
  0x6b   : > { %3547 = vmatpush3.bf16.xpose.msk.msra.mxu1 %vm3893_vm1, %v3545_v53  ;;  %3595 = vmatpush3.bf16.xpose.msk.msra.mxu0 %vm3893_vm1, %v3593_v54  ;;  %v318_v53 = vld [vmem:[%s5539_s1 + $0x178] sm:$0xff]  ;;  %v349_v54 = vld [vmem:[%s5539_s1 + $0x270] sm:$0xff] }
  0x6c   : > { %3550 = vmatprep.subr.msk.bf16.mxu1 %vm3893_vm1, %v3548_v55  ;;  %3598 = vmatprep.subr.msk.bf16.mxu0 %vm3893_vm1, %v3596_v56  ;;  %v350_v55 = vld [vmem:[%s5539_s1 + $0x278] sm:$0xff] }
  0x6d   : > { %3043 = vmatmul.mubr.msk.f32.gmra.mrb[14].mxu0 %vm367_vm0, %v4263_v51  ;;  %3107 = vmatmul.mubr.msk.f32.gmra.mrb[14].mxu1 %vm367_vm0, %v246_v52  ;;  %v317_v52 = vld [vmem:[%s5539_s1 + $0x170] sm:$0xff]  ;;  %v4470_v56 = vld [vmem:[%s3935_s3 + $0x78] sm:$0xff]  ;;  %v3617_v60 = vpack.c.bf16 %v350_v55, %v349_v54 }
  0x6e   : > { %3044 = vmatprep.mubr.msk.f32.mxu0 %vm367_vm0, %v4273_v57  ;;  %3108 = vmatprep.mubr.msk.f32.mxu1 %vm367_vm0, %v247_v58  ;;  %v3569_v59 = vpack.c.bf16 %v318_v53, %v317_v52 }
  0x71   : > { %3045 = vmatmul.mubr.msk.f32.gmra.mrb[16].mxu0 %vm367_vm0, %v4273_v57  ;;  %3109 = vmatmul.mubr.msk.f32.gmra.mrb[16].mxu1 %vm367_vm0, %v247_v58  ;;  %v4473_v58 = vld [vmem:[%s3935_s3 + $0x178] sm:$0xff] }
  0x72   : > { %3046 = vmatprep.mubr.msk.f32.mxu0 %vm367_vm0, %v4315_v5  ;;  %3110 = vmatprep.mubr.msk.f32.mxu1 %vm367_vm0, %v248_v6 }
  0x73   : > { %3553 = vmatpush3.bf16.xpose.msk.msra.mxu1 %vm3893_vm1, %v3551_v7  ;;  %3601 = vmatpush3.bf16.xpose.msk.msra.mxu0 %vm3893_vm1, %v3599_v9  ;;  %v4533_v7 = vld [vmem:[%s3935_s3 + $0xa0] sm:$0xff] }
  0x74   : > { %3556 = vmatprep.subr.msk.bf16.mxu1 %vm3893_vm1, %v3554_v10  ;;  %3604 = vmatprep.subr.msk.bf16.mxu0 %vm3893_vm1, %v3602_v11  ;;  %v259_v9 = vld [vmem:[%s3935_s3 + $0x1a0] sm:$0xff]  ;;  %v4543_v10 = vld [vmem:[%s3935_s3 + $0xa8] sm:$0xff] }
  0x75   : > { %3047 = vmatmul.mubr.msk.f32.gmra.mrb[18].mxu0 %vm367_vm0, %v4315_v5  ;;  %3111 = vmatmul.mubr.msk.f32.gmra.mrb[18].mxu1 %vm367_vm0, %v248_v6  ;;  %v258_v6 = vld [vmem:[%s3935_s3 + $0x198] sm:$0xff]  ;;  %v260_v11 = vld [vmem:[%s3935_s3 + $0x1a8] sm:$0xff] }
  0x76   : > { %3048 = vmatprep.mubr.msk.f32.mxu0 %vm367_vm0, %v4325_v12  ;;  %3112 = vmatprep.mubr.msk.f32.mxu1 %vm367_vm0, %v249_v13 }
  0x79   : > { %3049 = vmatmul.mubr.msk.f32.gmra.mrb[20].mxu0 %vm367_vm0, %v4325_v12  ;;  %3113 = vmatmul.mubr.msk.f32.gmra.mrb[20].mxu1 %vm367_vm0, %v249_v13  ;;  %v4553_v13 = vld [vmem:[%s3935_s3 + $0xb0] sm:$0xff] }
  0x7a   : > { %3050 = vmatprep.mubr.msk.f32.mxu0 %vm367_vm0, %v4367_v24  ;;  %3114 = vmatprep.mubr.msk.f32.mxu1 %vm367_vm0, %v4370_v26 }
  0x7b   : > { %3559 = vmatpush3.bf16.xpose.msk.msra.mxu1 %vm3893_vm1, %v3557_v27  ;;  %3607 = vmatpush3.bf16.xpose.msk.msra.mxu0 %vm3893_vm1, %v3605_v28  ;;  %v265_v27 = vld [vmem:[%s3935_s3 + $0x1d0] sm:$0xff]  ;;  %v4603_v28 = vld [vmem:[%s3935_s3 + $0xd8] sm:$0xff] }
  0x7c   : > { %3562 = vmatprep.subr.msk.bf16.mxu1 %vm3893_vm1, %v3560_v29  ;;  %3610 = vmatprep.subr.msk.bf16.mxu0 %vm3893_vm1, %v3608_v30  ;;  %v266_v29 = vld [vmem:[%s3935_s3 + $0x1d8] sm:$0xff]  ;;  %v4613_v30 = vld [vmem:[%s3935_s3 + $0xe0] sm:$0xff] }
  0x7d   : > { %3051 = vmatmul.mubr.msk.f32.gmra.mrb[22].mxu0 %vm367_vm0, %v4367_v24  ;;  %3115 = vmatmul.mubr.msk.f32.gmra.mrb[22].mxu1 %vm367_vm0, %v4370_v26 }
  0x7e   : > { %3052 = vmatprep.mubr.msk.f32.mxu0 %vm367_vm0, %v4380_v31  ;;  %3116 = vmatprep.mubr.msk.f32.mxu1 %vm367_vm0, %v251_v32 }
  0x81   : > { %3053 = vmatmul.mubr.msk.f32.gmra.mrb[24].mxu0 %vm367_vm0, %v4380_v31  ;;  %3117 = vmatmul.mubr.msk.f32.gmra.mrb[24].mxu1 %vm367_vm0, %v251_v32  ;;  %v267_v32 = vld [vmem:[%s3935_s3 + $0x1e0] sm:$0xff] }
  0x82   : > { %3054 = vmatprep.mubr.msk.f32.mxu0 %vm367_vm0, %v4423_v43  ;;  %3118 = vmatprep.mubr.msk.f32.mxu1 %vm367_vm0, %v4426_v44 }
  0x83   : > { %3565 = vmatpush3.bf16.xpose.msk.msra.mxu1 %vm3893_vm1, %v3563_v45  ;;  %3613 = vmatpush3.bf16.xpose.msk.msra.mxu0 %vm3893_vm1, %v3611_v46 }
  0x84   : > { %3568 = vmatprep.subr.msk.bf16.mxu1 %vm3893_vm1, %v3566_v47  ;;  %3616 = vmatprep.subr.msk.bf16.mxu0 %vm3893_vm1, %v3614_v48 }
  0x85   : > { %3055 = vmatmul.mubr.msk.f32.gmra.mrb[26].mxu0 %vm367_vm0, %v4423_v43  ;;  %3119 = vmatmul.mubr.msk.f32.gmra.mrb[26].mxu1 %vm367_vm0, %v4426_v44 }
  0x86   : > { %3056 = vmatprep.mubr.msk.f32.mxu0 %vm367_vm0, %v4436_v49  ;;  %3120 = vmatprep.mubr.msk.f32.mxu1 %vm367_vm0, %v4439_v50 }
  0x89   : > { %3057 = vmatmul.mubr.msk.f32.gmra.mrb[28].mxu0 %vm367_vm0, %v4436_v49  ;;  %3121 = vmatmul.mubr.msk.f32.gmra.mrb[28].mxu1 %vm367_vm0, %v4439_v50 }
  0x8a   : > { %3058 = vmatprep.mubr.msk.f32.mxu0 %vm367_vm0, %v4470_v56  ;;  %3122 = vmatprep.mubr.msk.f32.mxu1 %vm367_vm0, %v4473_v58 }
  0x8b   : > { %3571 = vmatpush3.bf16.xpose.msk.msra.mxu1 %vm3893_vm1, %v3569_v59  ;;  %3619 = vmatpush3.bf16.xpose.msk.msra.mxu0 %vm3893_vm1, %v3617_v60 }
  0x8d   : > { %3059 = vmatmul.mubr.msk.f32.gmra.mrb[30].mxu0 %vm367_vm0, %v4470_v56  ;;  %3123 = vmatmul.mubr.msk.f32.gmra.mrb[30].mxu1 %vm367_vm0, %v4473_v58 }
  0x8e   : > { %3060 = vmatprep.mubr.msk.f32.mxu0 %vm367_vm0, %v4484_v61  ;;  %3124 = vmatprep.mubr.msk.f32.mxu1 %vm367_vm0, %v4487_v62 }
  0x91   : > { %3061 = vmatmul.mubr.msk.f32.gmra.mrb[32].mxu0 %vm367_vm0, %v4484_v61  ;;  %3125 = vmatmul.mubr.msk.f32.gmra.mrb[32].mxu1 %vm367_vm0, %v4487_v62 }
  0x92   : > { %3062 = vmatprep.mubr.msk.f32.mxu0 %vm367_vm0, %v4502_v63  ;;  %3126 = vmatprep.mubr.msk.f32.mxu1 %vm367_vm0, %v256_v0 }
  0x95   : > { %3063 = vmatmul.mubr.msk.f32.gmra.mrb[34].mxu0 %vm367_vm0, %v4502_v63  ;;  %3127 = vmatmul.mubr.msk.f32.gmra.mrb[34].mxu1 %vm367_vm0, %v256_v0 }
  0x96   : > { %3064 = vmatprep.mubr.msk.f32.mxu0 %vm367_vm0, %v4513_v4  ;;  %3128 = vmatprep.mubr.msk.f32.mxu1 %vm367_vm0, %v257_v1 }
  0x99   : > { %3065 = vmatmul.mubr.msk.f32.gmra.mrb[36].mxu0 %vm367_vm0, %v4513_v4  ;;  %3129 = vmatmul.mubr.msk.f32.gmra.mrb[36].mxu1 %vm367_vm0, %v257_v1 }
  0x9a   : > { %3066 = vmatprep.mubr.msk.f32.mxu0 %vm367_vm0, %v4523_v2  ;;  %3130 = vmatprep.mubr.msk.f32.mxu1 %vm367_vm0, %v258_v6 }
  0x9d   : > { %3067 = vmatmul.mubr.msk.f32.gmra.mrb[38].mxu0 %vm367_vm0, %v4523_v2  ;;  %3131 = vmatmul.mubr.msk.f32.gmra.mrb[38].mxu1 %vm367_vm0, %v258_v6 }
  0x9e   : > { %3068 = vmatprep.mubr.msk.f32.mxu0 %vm367_vm0, %v4533_v7  ;;  %3132 = vmatprep.mubr.msk.f32.mxu1 %vm367_vm0, %v259_v9 }
  0xa1   : > { %3069 = vmatmul.mubr.msk.f32.gmra.mrb[40].mxu0 %vm367_vm0, %v4533_v7  ;;  %3133 = vmatmul.mubr.msk.f32.gmra.mrb[40].mxu1 %vm367_vm0, %v259_v9 }
  0xa2   : > { %3070 = vmatprep.mubr.msk.f32.mxu0 %vm367_vm0, %v4543_v10  ;;  %3134 = vmatprep.mubr.msk.f32.mxu1 %vm367_vm0, %v260_v11 }
  0xa5   : > { %3071 = vmatmul.mubr.msk.f32.gmra.mrb[42].mxu0 %vm367_vm0, %v4543_v10  ;;  %3135 = vmatmul.mubr.msk.f32.gmra.mrb[42].mxu1 %vm367_vm0, %v260_v11 }
  0xa6   : > { %3072 = vmatprep.mubr.msk.f32.mxu0 %vm367_vm0, %v4553_v13  ;;  %3136 = vmatprep.mubr.msk.f32.mxu1 %vm367_vm0, %v261_v14 }
  0xa9   : > { %3073 = vmatmul.mubr.msk.f32.gmra.mrb[44].mxu0 %vm367_vm0, %v4553_v13  ;;  %3137 = vmatmul.mubr.msk.f32.gmra.mrb[44].mxu1 %vm367_vm0, %v261_v14 }
  0xaa   : > { %3074 = vmatprep.mubr.msk.f32.mxu0 %vm367_vm0, %v4563_v15  ;;  %3138 = vmatprep.mubr.msk.f32.mxu1 %vm367_vm0, %v262_v17 }
  0xad   : > { %3075 = vmatmul.mubr.msk.f32.gmra.mrb[46].mxu0 %vm367_vm0, %v4563_v15  ;;  %3139 = vmatmul.mubr.msk.f32.gmra.mrb[46].mxu1 %vm367_vm0, %v262_v17 }
  0xae   : > { %3076 = vmatprep.mubr.msk.f32.mxu0 %vm367_vm0, %v4573_v18  ;;  %3140 = vmatprep.mubr.msk.f32.mxu1 %vm367_vm0, %v263_v20 }
  0xb1   : > { %3077 = vmatmul.mubr.msk.f32.gmra.mrb[48].mxu0 %vm367_vm0, %v4573_v18  ;;  %3141 = vmatmul.mubr.msk.f32.gmra.mrb[48].mxu1 %vm367_vm0, %v263_v20  ;;  %v3694_v20 = vld [vmem:[%s3935_s3 + $0x100] sm:$0xff] }
  0xb2   : > { %3078 = vmatprep.mubr.msk.f32.mxu0 %vm367_vm0, %v4583_v21  ;;  %3142 = vmatprep.mubr.msk.f32.mxu1 %vm367_vm0, %v264_v22 }
  0xb5   : > { %3079 = vmatmul.mubr.msk.f32.gmra.mrb[50].mxu0 %vm367_vm0, %v4583_v21  ;;  %3143 = vmatmul.mubr.msk.f32.gmra.mrb[50].mxu1 %vm367_vm0, %v264_v22 }
  0xb6   : > { %3080 = vmatprep.mubr.msk.f32.mxu0 %vm367_vm0, %v4593_v23  ;;  %3144 = vmatprep.mubr.msk.f32.mxu1 %vm367_vm0, %v265_v27 }
  0xb9   : > { %3081 = vmatmul.mubr.msk.f32.gmra.mrb[52].mxu0 %vm367_vm0, %v4593_v23  ;;  %3145 = vmatmul.mubr.msk.f32.gmra.mrb[52].mxu1 %vm367_vm0, %v265_v27 }
  0xba   : > { %3082 = vmatprep.mubr.msk.f32.mxu0 %vm367_vm0, %v4603_v28  ;;  %3146 = vmatprep.mubr.msk.f32.mxu1 %vm367_vm0, %v266_v29 }
  0xbd   : > { %3083 = vmatmul.mubr.msk.f32.gmra.mrb[54].mxu0 %vm367_vm0, %v4603_v28  ;;  %3147 = vmatmul.mubr.msk.f32.gmra.mrb[54].mxu1 %vm367_vm0, %v266_v29 }
  0xbe   : > { %3084 = vmatprep.mubr.msk.f32.mxu0 %vm367_vm0, %v4613_v30  ;;  %3148 = vmatprep.mubr.msk.f32.mxu1 %vm367_vm0, %v267_v32 }
  0xc1   : > { %3085 = vmatmul.mubr.msk.f32.gmra.mrb[56].mxu0 %vm367_vm0, %v4613_v30  ;;  %3149 = vmatmul.mubr.msk.f32.gmra.mrb[56].mxu1 %vm367_vm0, %v267_v32 }
  0xc2   : > { %3086 = vmatprep.mubr.msk.f32.mxu0 %vm367_vm0, %v4623_v33  ;;  %3150 = vmatprep.mubr.msk.f32.mxu1 %vm367_vm0, %v268_v34 }
  0xc5   : > { %3087 = vmatmul.mubr.msk.f32.gmra.mrb[58].mxu0 %vm367_vm0, %v4623_v33  ;;  %3151 = vmatmul.mubr.msk.f32.gmra.mrb[58].mxu1 %vm367_vm0, %v268_v34  ;;  %v3696_v34 = vld [vmem:[%s3935_s3 + $0x110] sm:$0xff] }
  0xc6   : > { %3088 = vmatprep.mubr.msk.f32.mxu0 %vm367_vm0, %v4633_v36  ;;  %3152 = vmatprep.mubr.msk.f32.mxu1 %vm367_vm0, %v269_v37 }
  0xc9   : > { %3089 = vmatmul.mubr.msk.f32.gmra.mrb[60].mxu0 %vm367_vm0, %v4633_v36  ;;  %3153 = vmatmul.mubr.msk.f32.gmra.mrb[60].mxu1 %vm367_vm0, %v269_v37 }
  0xca   : > { %3090 = vmatprep.mubr.msk.f32.mxu0 %vm367_vm0, %v4643_v38  ;;  %3154 = vmatprep.mubr.msk.f32.mxu1 %vm367_vm0, %v270_v39 }
  0xcd   : > { %3091 = vmatmul.mubr.msk.f32.gmra.mrb[62].mxu0 %vm367_vm0, %v4643_v38  ;;  %3155 = vmatmul.mubr.msk.f32.gmra.mrb[62].mxu1 %vm367_vm0, %v270_v39 }
  0xce   : > { %3188 = vmatprep.mubr.msk.f32.mxu1 %vm367_vm0, %v3938_v16  ;;  %3348 = vmatprep.mubr.msk.f32.mxu0 %vm367_vm0, %v3938_v16 }
  0xd1   : > { %3189 = vmatmul.mubr.msk.f32.vlgmr.msra.gmra.mrb[64].mxu1 %vm367_vm0, %v3938_v16  ;;  %3349 = vmatmul.mubr.msk.f32.vlgmr.msra.gmra.mrb[64].mxu0 %vm367_vm0, %v3938_v16 }
  0xd2   : > { %3190 = vmatprep.mubr.msk.f32.mxu1 %vm367_vm0, %v4106_v3  ;;  %3350 = vmatprep.mubr.msk.f32.mxu0 %vm367_vm0, %v4106_v3 }
  0xd5   : > { %3191 = vmatmul.mubr.msk.f32.gmra.mrb[66].mxu1 %vm367_vm0, %v4106_v3  ;;  %3351 = vmatmul.mubr.msk.f32.gmra.mrb[66].mxu0 %vm367_vm0, %v4106_v3 }
  0xd6   : > { %3192 = vmatprep.mubr.msk.f32.mxu1 %vm367_vm0, %v4118_v8  ;;  %3352 = vmatprep.mubr.msk.f32.mxu0 %vm367_vm0, %v4118_v8 }
  0xd9   : > { %3193 = vmatmul.mubr.msk.f32.gmra.mrb[68].mxu1 %vm367_vm0, %v4118_v8  ;;  %3353 = vmatmul.mubr.msk.f32.gmra.mrb[68].mxu0 %vm367_vm0, %v4118_v8 }
  0xda   : > { %3194 = vmatprep.mubr.msk.f32.mxu1 %vm367_vm0, %v4159_v19  ;;  %3354 = vmatprep.mubr.msk.f32.mxu0 %vm367_vm0, %v4159_v19 }
  0xdd   : > { %3195 = vmatmul.mubr.msk.f32.gmra.mrb[70].mxu1 %vm367_vm0, %v4159_v19  ;;  %3355 = vmatmul.mubr.msk.f32.gmra.mrb[70].mxu0 %vm367_vm0, %v4159_v19 }
  0xde   : > { %3196 = vmatprep.mubr.msk.f32.mxu1 %vm367_vm0, %v4169_v25  ;;  %3356 = vmatprep.mubr.msk.f32.mxu0 %vm367_vm0, %v4169_v25 }
  0xe1   : > { %3197 = vmatmul.mubr.msk.f32.gmra.mrb[72].mxu1 %vm367_vm0, %v4169_v25  ;;  %3357 = vmatmul.mubr.msk.f32.gmra.mrb[72].mxu0 %vm367_vm0, %v4169_v25 }
  0xe2   : > { %3198 = vmatprep.mubr.msk.f32.mxu1 %vm367_vm0, %v4211_v35  ;;  %3358 = vmatprep.mubr.msk.f32.mxu0 %vm367_vm0, %v4211_v35 }
  0xe5   : > { %3199 = vmatmul.mubr.msk.f32.gmra.mrb[74].mxu1 %vm367_vm0, %v4211_v35  ;;  %3359 = vmatmul.mubr.msk.f32.gmra.mrb[74].mxu0 %vm367_vm0, %v4211_v35 }
  0xe6   : > { %3200 = vmatprep.mubr.msk.f32.mxu1 %vm367_vm0, %v4221_v41  ;;  %3360 = vmatprep.mubr.msk.f32.mxu0 %vm367_vm0, %v4221_v41 }
  0xe9   : > { %3201 = vmatmul.mubr.msk.f32.gmra.mrb[76].mxu1 %vm367_vm0, %v4221_v41  ;;  %3361 = vmatmul.mubr.msk.f32.gmra.mrb[76].mxu0 %vm367_vm0, %v4221_v41 }
  0xea   : > { %3202 = vmatprep.mubr.msk.f32.mxu1 %vm367_vm0, %v4263_v51  ;;  %3362 = vmatprep.mubr.msk.f32.mxu0 %vm367_vm0, %v4263_v51 }
  0xed   : > { %3203 = vmatmul.mubr.msk.f32.gmra.mrb[78].mxu1 %vm367_vm0, %v4263_v51  ;;  %3363 = vmatmul.mubr.msk.f32.gmra.mrb[78].mxu0 %vm367_vm0, %v4263_v51 }
  0xee   : > { %3204 = vmatprep.mubr.msk.f32.mxu1 %vm367_vm0, %v4273_v57  ;;  %3364 = vmatprep.mubr.msk.f32.mxu0 %vm367_vm0, %v4273_v57 }
  0xf1   : > { %3205 = vmatmul.mubr.msk.f32.gmra.mrb[80].mxu1 %vm367_vm0, %v4273_v57  ;;  %3365 = vmatmul.mubr.msk.f32.gmra.mrb[80].mxu0 %vm367_vm0, %v4273_v57 }
  0xf2   : > { %3206 = vmatprep.mubr.msk.f32.mxu1 %vm367_vm0, %v4315_v5  ;;  %3366 = vmatprep.mubr.msk.f32.mxu0 %vm367_vm0, %v4315_v5 }
  0xf5   : > { %3207 = vmatmul.mubr.msk.f32.gmra.mrb[82].mxu1 %vm367_vm0, %v4315_v5  ;;  %3367 = vmatmul.mubr.msk.f32.gmra.mrb[82].mxu0 %vm367_vm0, %v4315_v5 }
  0xf6   : > { %3208 = vmatprep.mubr.msk.f32.mxu1 %vm367_vm0, %v4325_v12  ;;  %3368 = vmatprep.mubr.msk.f32.mxu0 %vm367_vm0, %v4325_v12 }
  0xf9   : > { %3209 = vmatmul.mubr.msk.f32.gmra.mrb[84].mxu1 %vm367_vm0, %v4325_v12  ;;  %3369 = vmatmul.mubr.msk.f32.gmra.mrb[84].mxu0 %vm367_vm0, %v4325_v12 }
  0xfa   : > { %3210 = vmatprep.mubr.msk.f32.mxu1 %vm367_vm0, %v4367_v24  ;;  %3370 = vmatprep.mubr.msk.f32.mxu0 %vm367_vm0, %v4367_v24 }
  0xfd   : > { %3211 = vmatmul.mubr.msk.f32.gmra.mrb[86].mxu1 %vm367_vm0, %v4367_v24  ;;  %3371 = vmatmul.mubr.msk.f32.gmra.mrb[86].mxu0 %vm367_vm0, %v4367_v24 }
  0xfe   : > { %3212 = vmatprep.mubr.msk.f32.mxu1 %vm367_vm0, %v4380_v31  ;;  %3372 = vmatprep.mubr.msk.f32.mxu0 %vm367_vm0, %v4380_v31 }
 0x101   : > { %3213 = vmatmul.mubr.msk.f32.gmra.mrb[88].mxu1 %vm367_vm0, %v4380_v31  ;;  %3373 = vmatmul.mubr.msk.f32.gmra.mrb[88].mxu0 %vm367_vm0, %v4380_v31 }
 0x102   : > { %3214 = vmatprep.mubr.msk.f32.mxu1 %vm367_vm0, %v4423_v43  ;;  %3374 = vmatprep.mubr.msk.f32.mxu0 %vm367_vm0, %v4423_v43 }
 0x105   : > { %3215 = vmatmul.mubr.msk.f32.gmra.mrb[90].mxu1 %vm367_vm0, %v4423_v43  ;;  %3375 = vmatmul.mubr.msk.f32.gmra.mrb[90].mxu0 %vm367_vm0, %v4423_v43 }
 0x106   : > { %3216 = vmatprep.mubr.msk.f32.mxu1 %vm367_vm0, %v4436_v49  ;;  %3376 = vmatprep.mubr.msk.f32.mxu0 %vm367_vm0, %v4436_v49 }
 0x109   : > { %3217 = vmatmul.mubr.msk.f32.gmra.mrb[92].mxu1 %vm367_vm0, %v4436_v49  ;;  %3377 = vmatmul.mubr.msk.f32.gmra.mrb[92].mxu0 %vm367_vm0, %v4436_v49 }
 0x10a   : > { %3218 = vmatprep.mubr.msk.f32.mxu1 %vm367_vm0, %v4470_v56  ;;  %3378 = vmatprep.mubr.msk.f32.mxu0 %vm367_vm0, %v4470_v56 }
 0x10d   : > { %3219 = vmatmul.mubr.msk.f32.gmra.mrb[94].mxu1 %vm367_vm0, %v4470_v56  ;;  %3379 = vmatmul.mubr.msk.f32.gmra.mrb[94].mxu0 %vm367_vm0, %v4470_v56 }
 0x10e   : > { %3220 = vmatprep.mubr.msk.f32.mxu1 %vm367_vm0, %v4484_v61  ;;  %3380 = vmatprep.mubr.msk.f32.mxu0 %vm367_vm0, %v4484_v61 }
 0x111   : > { %3221 = vmatmul.mubr.msk.f32.gmra.mrb[96].mxu1 %vm367_vm0, %v4484_v61  ;;  %3381 = vmatmul.mubr.msk.f32.gmra.mrb[96].mxu0 %vm367_vm0, %v4484_v61 }
 0x112   : > { %3222 = vmatprep.mubr.msk.f32.mxu1 %vm367_vm0, %v4502_v63  ;;  %3382 = vmatprep.mubr.msk.f32.mxu0 %vm367_vm0, %v4502_v63 }
 0x115   : > { %3223 = vmatmul.mubr.msk.f32.gmra.mrb[98].mxu1 %vm367_vm0, %v4502_v63  ;;  %3383 = vmatmul.mubr.msk.f32.gmra.mrb[98].mxu0 %vm367_vm0, %v4502_v63 }
 0x116   : > { %3224 = vmatprep.mubr.msk.f32.mxu1 %vm367_vm0, %v4513_v4  ;;  %3384 = vmatprep.mubr.msk.f32.mxu0 %vm367_vm0, %v4513_v4 }
 0x119   : > { %3225 = vmatmul.mubr.msk.f32.gmra.mrb[100].mxu1 %vm367_vm0, %v4513_v4  ;;  %3385 = vmatmul.mubr.msk.f32.gmra.mrb[100].mxu0 %vm367_vm0, %v4513_v4 }
 0x11a   : > { %3226 = vmatprep.mubr.msk.f32.mxu1 %vm367_vm0, %v4523_v2  ;;  %3386 = vmatprep.mubr.msk.f32.mxu0 %vm367_vm0, %v4523_v2 }
 0x11d   : > { %3227 = vmatmul.mubr.msk.f32.gmra.mrb[102].mxu1 %vm367_vm0, %v4523_v2  ;;  %3387 = vmatmul.mubr.msk.f32.gmra.mrb[102].mxu0 %vm367_vm0, %v4523_v2 }
 0x11e   : > { %3228 = vmatprep.mubr.msk.f32.mxu1 %vm367_vm0, %v4533_v7  ;;  %3388 = vmatprep.mubr.msk.f32.mxu0 %vm367_vm0, %v4533_v7 }
 0x121   : > { %3229 = vmatmul.mubr.msk.f32.gmra.mrb[104].mxu1 %vm367_vm0, %v4533_v7  ;;  %3389 = vmatmul.mubr.msk.f32.gmra.mrb[104].mxu0 %vm367_vm0, %v4533_v7 }
 0x122   : > { %3230 = vmatprep.mubr.msk.f32.mxu1 %vm367_vm0, %v4543_v10  ;;  %3390 = vmatprep.mubr.msk.f32.mxu0 %vm367_vm0, %v4543_v10 }
 0x124   : > { %v914_v16 = vpop.f32.mrb[0].mxu0  ;;  %v1106_v3 = vpop.f32.mrb[0].mxu1 }
 0x125   : > { %2195 = vst [vmem:[%s4830_s28] sm:$0xff] %v914_v16  ;;  %2387 = vst [vmem:[%s4830_s28 + $0x600] sm:$0xff] %v1106_v3  ;;  %v916_v8 = vpop.f32.mrb[1].mxu0  ;;  %v1108_v19 = vpop.f32.mrb[1].mxu1  ;;  %3231 = vmatmul.mubr.msk.f32.gmra.mrb[106].mxu1 %vm367_vm0, %v4543_v10  ;;  %3391 = vmatmul.mubr.msk.f32.gmra.mrb[106].mxu0 %vm367_vm0, %v4543_v10  ;;  %v3697_v16 = vld [vmem:[%s3935_s3 + $0x118] sm:$0xff] }
 0x126   : > { %2196 = vst [vmem:[%s4830_s28 + $0x8] sm:$0xff] %v916_v8  ;;  %2388 = vst [vmem:[%s4830_s28 + $0x608] sm:$0xff] %v1108_v19  ;;  %3232 = vmatprep.mubr.msk.f32.mxu1 %vm367_vm0, %v4553_v13  ;;  %3392 = vmatprep.mubr.msk.f32.mxu0 %vm367_vm0, %v4553_v13 }
 0x128   : > { %v920_v25 = vpop.f32.mrb[2].mxu0  ;;  %v1112_v35 = vpop.f32.mrb[2].mxu1 }
 0x129   : > { %2201 = vst [vmem:[%s4830_s28 + $0x30] sm:$0xff] %v920_v25  ;;  %2393 = vst [vmem:[%s4830_s28 + $0x630] sm:$0xff] %v1112_v35  ;;  %v922_v41 = vpop.f32.mrb[3].mxu0  ;;  %v1114_v51 = vpop.f32.mrb[3].mxu1  ;;  %3233 = vmatmul.mubr.msk.f32.gmra.mrb[108].mxu1 %vm367_vm0, %v4553_v13  ;;  %3393 = vmatmul.mubr.msk.f32.gmra.mrb[108].mxu0 %vm367_vm0, %v4553_v13  ;;  %v3698_v35 = vld [vmem:[%s3935_s3 + $0x120] sm:$0xff] }
 0x12a   : > { %2202 = vst [vmem:[%s4830_s28 + $0x38] sm:$0xff] %v922_v41  ;;  %2394 = vst [vmem:[%s4830_s28 + $0x638] sm:$0xff] %v1114_v51  ;;  %3234 = vmatprep.mubr.msk.f32.mxu1 %vm367_vm0, %v4563_v15  ;;  %3394 = vmatprep.mubr.msk.f32.mxu0 %vm367_vm0, %v4563_v15 }
 0x12c   : > { %v926_v57 = vpop.f32.mrb[4].mxu0  ;;  %v1118_v5 = vpop.f32.mrb[4].mxu1 }
 0x12d   : > { %2207 = vst [vmem:[%s4830_s28 + $0x60] sm:$0xff] %v926_v57  ;;  %2399 = vst [vmem:[%s4830_s28 + $0x660] sm:$0xff] %v1118_v5  ;;  %v928_v12 = vpop.f32.mrb[5].mxu0  ;;  %v1120_v24 = vpop.f32.mrb[5].mxu1  ;;  %3235 = vmatmul.mubr.msk.f32.gmra.mrb[110].mxu1 %vm367_vm0, %v4563_v15  ;;  %3395 = vmatmul.mubr.msk.f32.gmra.mrb[110].mxu0 %vm367_vm0, %v4563_v15 }
 0x12e   : > { %2208 = vst [vmem:[%s4830_s28 + $0x68] sm:$0xff] %v928_v12  ;;  %2400 = vst [vmem:[%s4830_s28 + $0x668] sm:$0xff] %v1120_v24  ;;  %3236 = vmatprep.mubr.msk.f32.mxu1 %vm367_vm0, %v4573_v18  ;;  %3396 = vmatprep.mubr.msk.f32.mxu0 %vm367_vm0, %v4573_v18  ;;  %v3699_v12 = vld [vmem:[%s3935_s3 + $0x128] sm:$0xff] }
 0x130   : > { %v932_v31 = vpop.f32.mrb[6].mxu0  ;;  %v1124_v40 = vpop.f32.mrb[6].mxu1 }
 0x131   : > { %2213 = vst [vmem:[%s4830_s28 + $0x90] sm:$0xff] %v932_v31  ;;  %2405 = vst [vmem:[%s4830_s28 + $0x690] sm:$0xff] %v1124_v40  ;;  %v934_v42 = vpop.f32.mrb[7].mxu0  ;;  %v1126_v43 = vpop.f32.mrb[7].mxu1  ;;  %3237 = vmatmul.mubr.msk.f32.gmra.mrb[112].mxu1 %vm367_vm0, %v4573_v18  ;;  %3397 = vmatmul.mubr.msk.f32.gmra.mrb[112].mxu0 %vm367_vm0, %v4573_v18 }
 0x132   : > { %2214 = vst [vmem:[%s4830_s28 + $0x98] sm:$0xff] %v934_v42  ;;  %2406 = vst [vmem:[%s4830_s28 + $0x698] sm:$0xff] %v1126_v43  ;;  %3238 = vmatprep.mubr.msk.f32.mxu1 %vm367_vm0, %v4583_v21  ;;  %3398 = vmatprep.mubr.msk.f32.mxu0 %vm367_vm0, %v4583_v21  ;;  %v3700_v43 = vld [vmem:[%s3935_s3 + $0x130] sm:$0xff] }
 0x134   : > { %v938_v45 = vpop.f32.mrb[8].mxu0  ;;  %v1130_v46 = vpop.f32.mrb[8].mxu1 }
 0x135   : > { %2219 = vst [vmem:[%s4830_s28 + $0xc0] sm:$0xff] %v938_v45  ;;  %2411 = vst [vmem:[%s4830_s28 + $0x6c0] sm:$0xff] %v1130_v46  ;;  %v940_v47 = vpop.f32.mrb[9].mxu0  ;;  %v1132_v48 = vpop.f32.mrb[9].mxu1  ;;  %3239 = vmatmul.mubr.msk.f32.gmra.mrb[114].mxu1 %vm367_vm0, %v4583_v21  ;;  %3399 = vmatmul.mubr.msk.f32.gmra.mrb[114].mxu0 %vm367_vm0, %v4583_v21 }
 0x136   : > { %2220 = vst [vmem:[%s4830_s28 + $0xc8] sm:$0xff] %v940_v47  ;;  %2412 = vst [vmem:[%s4830_s28 + $0x6c8] sm:$0xff] %v1132_v48  ;;  %3240 = vmatprep.mubr.msk.f32.mxu1 %vm367_vm0, %v4593_v23  ;;  %3400 = vmatprep.mubr.msk.f32.mxu0 %vm367_vm0, %v4593_v23 }
 0x138   : > { %v944_v49 = vpop.f32.mrb[10].mxu0  ;;  %v1136_v52 = vpop.f32.mrb[10].mxu1 }
 0x139   : > { %2225 = vst [vmem:[%s4830_s28 + $0xf0] sm:$0xff] %v944_v49  ;;  %2417 = vst [vmem:[%s4830_s28 + $0x6f0] sm:$0xff] %v1136_v52  ;;  %v946_v53 = vpop.f32.mrb[11].mxu0  ;;  %v1138_v54 = vpop.f32.mrb[11].mxu1  ;;  %3241 = vmatmul.mubr.msk.f32.gmra.mrb[116].mxu1 %vm367_vm0, %v4593_v23  ;;  %3401 = vmatmul.mubr.msk.f32.gmra.mrb[116].mxu0 %vm367_vm0, %v4593_v23  ;;  %v3701_v49 = vld [vmem:[%s3935_s3 + $0x138] sm:$0xff] }
 0x13a   : > { %2226 = vst [vmem:[%s4830_s28 + $0xf8] sm:$0xff] %v946_v53  ;;  %2418 = vst [vmem:[%s4830_s28 + $0x6f8] sm:$0xff] %v1138_v54  ;;  %3242 = vmatprep.mubr.msk.f32.mxu1 %vm367_vm0, %v4603_v28  ;;  %3402 = vmatprep.mubr.msk.f32.mxu0 %vm367_vm0, %v4603_v28 }
 0x13c   : > { %v950_v55 = vpop.f32.mrb[12].mxu0  ;;  %v1142_v56 = vpop.f32.mrb[12].mxu1 }
 0x13d   : > { %2231 = vst [vmem:[%s4830_s28 + $0x120] sm:$0xff] %v950_v55  ;;  %2423 = vst [vmem:[%s4830_s28 + $0x720] sm:$0xff] %v1142_v56  ;;  %v952_v59 = vpop.f32.mrb[13].mxu0  ;;  %v1144_v60 = vpop.f32.mrb[13].mxu1  ;;  %3243 = vmatmul.mubr.msk.f32.gmra.mrb[118].mxu1 %vm367_vm0, %v4603_v28  ;;  %3403 = vmatmul.mubr.msk.f32.gmra.mrb[118].mxu0 %vm367_vm0, %v4603_v28  ;;  %v3695_v28 = vld [vmem:[%s3935_s3 + $0x108] sm:$0xff]  ;;  %v3702_v56 = vld [vmem:[%s3935_s3 + $0x140] sm:$0xff] }
 0x13e   : > { %2232 = vst [vmem:[%s4830_s28 + $0x128] sm:$0xff] %v952_v59  ;;  %2424 = vst [vmem:[%s4830_s28 + $0x728] sm:$0xff] %v1144_v60  ;;  %3244 = vmatprep.mubr.msk.f32.mxu1 %vm367_vm0, %v4613_v30  ;;  %3404 = vmatprep.mubr.msk.f32.mxu0 %vm367_vm0, %v4613_v30 }
 0x140   : > { %v956_v61 = vpop.f32.mrb[14].mxu0  ;;  %v1148_v63 = vpop.f32.mrb[14].mxu1 }
 0x141   : > { %2237 = vst [vmem:[%s4830_s28 + $0x150] sm:$0xff] %v956_v61  ;;  %2429 = vst [vmem:[%s4830_s28 + $0x750] sm:$0xff] %v1148_v63  ;;  %v958_v0 = vpop.f32.mrb[15].mxu0  ;;  %v1150_v4 = vpop.f32.mrb[15].mxu1  ;;  %3245 = vmatmul.mubr.msk.f32.gmra.mrb[120].mxu1 %vm367_vm0, %v4613_v30  ;;  %3405 = vmatmul.mubr.msk.f32.gmra.mrb[120].mxu0 %vm367_vm0, %v4613_v30 }
 0x142   : > { %2238 = vst [vmem:[%s4830_s28 + $0x158] sm:$0xff] %v958_v0  ;;  %2430 = vst [vmem:[%s4830_s28 + $0x758] sm:$0xff] %v1150_v4  ;;  %3246 = vmatprep.mubr.msk.f32.mxu1 %vm367_vm0, %v4623_v33  ;;  %3406 = vmatprep.mubr.msk.f32.mxu0 %vm367_vm0, %v4623_v33  ;;  %v3703_v0 = vld [vmem:[%s3935_s3 + $0x148] sm:$0xff] }
 0x144   : > { %v962_v1 = vpop.f32.mrb[16].mxu0  ;;  %v1154_v2 = vpop.f32.mrb[16].mxu1 }
 0x145   : > { %2243 = vst [vmem:[%s4830_s28 + $0x180] sm:$0xff] %v962_v1  ;;  %2435 = vst [vmem:[%s4830_s28 + $0x780] sm:$0xff] %v1154_v2  ;;  %v964_v6 = vpop.f32.mrb[17].mxu0  ;;  %v1156_v7 = vpop.f32.mrb[17].mxu1  ;;  %3247 = vmatmul.mubr.msk.f32.gmra.mrb[122].mxu1 %vm367_vm0, %v4623_v33  ;;  %3407 = vmatmul.mubr.msk.f32.gmra.mrb[122].mxu0 %vm367_vm0, %v4623_v33 }
 0x146   : > { %2244 = vst [vmem:[%s4830_s28 + $0x188] sm:$0xff] %v964_v6  ;;  %2436 = vst [vmem:[%s4830_s28 + $0x788] sm:$0xff] %v1156_v7  ;;  %3248 = vmatprep.mubr.msk.f32.mxu1 %vm367_vm0, %v4633_v36  ;;  %3408 = vmatprep.mubr.msk.f32.mxu0 %vm367_vm0, %v4633_v36  ;;  %v3704_v7 = vld [vmem:[%s3935_s3 + $0x150] sm:$0xff] }
 0x148   : > { %v968_v9 = vpop.f32.mrb[18].mxu0  ;;  %v1160_v10 = vpop.f32.mrb[18].mxu1 }
 0x149   : > { %2249 = vst [vmem:[%s4830_s28 + $0x1b0] sm:$0xff] %v968_v9  ;;  %2441 = vst [vmem:[%s4830_s28 + $0x7b0] sm:$0xff] %v1160_v10  ;;  %v970_v11 = vpop.f32.mrb[19].mxu0  ;;  %v1162_v13 = vpop.f32.mrb[19].mxu1  ;;  %3249 = vmatmul.mubr.msk.f32.gmra.mrb[124].mxu1 %vm367_vm0, %v4633_v36  ;;  %3409 = vmatmul.mubr.msk.f32.gmra.mrb[124].mxu0 %vm367_vm0, %v4633_v36 }
 0x14a   : > { %2250 = vst [vmem:[%s4830_s28 + $0x1b8] sm:$0xff] %v970_v11  ;;  %2442 = vst [vmem:[%s4830_s28 + $0x7b8] sm:$0xff] %v1162_v13  ;;  %3250 = vmatprep.mubr.msk.f32.mxu1 %vm367_vm0, %v4643_v38  ;;  %3410 = vmatprep.mubr.msk.f32.mxu0 %vm367_vm0, %v4643_v38 }
 0x14c   : > { %v974_v14 = vpop.f32.mrb[20].mxu0  ;;  %v1166_v15 = vpop.f32.mrb[20].mxu1 }
 0x14d   : > { %2255 = vst [vmem:[%s4830_s28 + $0x1e0] sm:$0xff] %v974_v14  ;;  %2447 = vst [vmem:[%s4830_s28 + $0x7e0] sm:$0xff] %v1166_v15  ;;  %v976_v17 = vpop.f32.mrb[21].mxu0  ;;  %v1168_v18 = vpop.f32.mrb[21].mxu1  ;;  %3251 = vmatmul.mubr.msk.f32.gmra.mrb[126].mxu1 %vm367_vm0, %v4643_v38  ;;  %3411 = vmatmul.mubr.msk.f32.gmra.mrb[126].mxu0 %vm367_vm0, %v4643_v38 }
 0x14e   : > { %2256 = vst [vmem:[%s4830_s28 + $0x1e8] sm:$0xff] %v976_v17  ;;  %2448 = vst [vmem:[%s4830_s28 + $0x7e8] sm:$0xff] %v1168_v18  ;;  %3252 = vmatprep.mubr.msk.f32.mxu1 %vm367_vm0, %v3694_v20  ;;  %3412 = vmatprep.mubr.msk.f32.mxu0 %vm367_vm0, %v3694_v20 }
 0x150   : > { %v980_v21 = vpop.f32.mrb[22].mxu0  ;;  %v1172_v22 = vpop.f32.mrb[22].mxu1 }
 0x151   : > { %2261 = vst [vmem:[%s4830_s28 + $0x210] sm:$0xff] %v980_v21  ;;  %2453 = vst [vmem:[%s4830_s28 + $0x810] sm:$0xff] %v1172_v22  ;;  %v982_v23 = vpop.f32.mrb[23].mxu0  ;;  %v1174_v27 = vpop.f32.mrb[23].mxu1  ;;  %3253 = vmatmul.mubr.msk.f32.gmra.mrb[128].mxu1 %vm367_vm0, %v3694_v20  ;;  %3413 = vmatmul.mubr.msk.f32.gmra.mrb[128].mxu0 %vm367_vm0, %v3694_v20  ;;  %v3705_v20 = vld [vmem:[%s3935_s3 + $0x158] sm:$0xff]  ;;  %v3706_v21 = vld [vmem:[%s3935_s3 + $0x160] sm:$0xff] }
 0x152   : > { %2262 = vst [vmem:[%s4830_s28 + $0x218] sm:$0xff] %v982_v23  ;;  %2454 = vst [vmem:[%s4830_s28 + $0x818] sm:$0xff] %v1174_v27  ;;  %3254 = vmatprep.mubr.msk.f32.mxu1 %vm367_vm0, %v3695_v28  ;;  %3414 = vmatprep.mubr.msk.f32.mxu0 %vm367_vm0, %v3695_v28 }
 0x154   : > { %v986_v29 = vpop.f32.mrb[24].mxu0  ;;  %v1178_v30 = vpop.f32.mrb[24].mxu1 }
 0x155   : > { %2267 = vst [vmem:[%s4830_s28 + $0x240] sm:$0xff] %v986_v29  ;;  %2459 = vst [vmem:[%s4830_s28 + $0x840] sm:$0xff] %v1178_v30  ;;  %v988_v32 = vpop.f32.mrb[25].mxu0  ;;  %v1180_v33 = vpop.f32.mrb[25].mxu1  ;;  %3255 = vmatmul.mubr.msk.f32.gmra.mrb[130].mxu1 %vm367_vm0, %v3695_v28  ;;  %3415 = vmatmul.mubr.msk.f32.gmra.mrb[130].mxu0 %vm367_vm0, %v3695_v28 }
 0x156   : > { %2268 = vst [vmem:[%s4830_s28 + $0x248] sm:$0xff] %v988_v32  ;;  %2460 = vst [vmem:[%s4830_s28 + $0x848] sm:$0xff] %v1180_v33  ;;  %3256 = vmatprep.mubr.msk.f32.mxu1 %vm367_vm0, %v3696_v34  ;;  %3416 = vmatprep.mubr.msk.f32.mxu0 %vm367_vm0, %v3696_v34  ;;  %v3707_v33 = vld [vmem:[%s3935_s3 + $0x168] sm:$0xff] }
 0x158   : > { %v992_v36 = vpop.f32.mrb[26].mxu0  ;;  %v1184_v37 = vpop.f32.mrb[26].mxu1 }
 0x159   : > { %2273 = vst [vmem:[%s4830_s28 + $0x270] sm:$0xff] %v992_v36  ;;  %2465 = vst [vmem:[%s4830_s28 + $0x870] sm:$0xff] %v1184_v37  ;;  %v994_v38 = vpop.f32.mrb[27].mxu0  ;;  %v1186_v39 = vpop.f32.mrb[27].mxu1  ;;  %3257 = vmatmul.mubr.msk.f32.gmra.mrb[132].mxu1 %vm367_vm0, %v3696_v34  ;;  %3417 = vmatmul.mubr.msk.f32.gmra.mrb[132].mxu0 %vm367_vm0, %v3696_v34 }
 0x15a   : > { %2274 = vst [vmem:[%s4830_s28 + $0x278] sm:$0xff] %v994_v38  ;;  %2466 = vst [vmem:[%s4830_s28 + $0x878] sm:$0xff] %v1186_v39  ;;  %3258 = vmatprep.mubr.msk.f32.mxu1 %vm367_vm0, %v3697_v16  ;;  %3418 = vmatprep.mubr.msk.f32.mxu0 %vm367_vm0, %v3697_v16  ;;  %v3708_v38 = vld [vmem:[%s3935_s3 + $0x170] sm:$0xff] }
 0x15c   : > { %v998_v3 = vpop.f32.mrb[28].mxu0  ;;  %v1190_v8 = vpop.f32.mrb[28].mxu1 }
 0x15d   : > { %2279 = vst [vmem:[%s4830_s28 + $0x2a0] sm:$0xff] %v998_v3  ;;  %2471 = vst [vmem:[%s4830_s28 + $0x8a0] sm:$0xff] %v1190_v8  ;;  %v1000_v19 = vpop.f32.mrb[29].mxu0  ;;  %v1192_v25 = vpop.f32.mrb[29].mxu1  ;;  %3259 = vmatmul.mubr.msk.f32.gmra.mrb[134].mxu1 %vm367_vm0, %v3697_v16  ;;  %3419 = vmatmul.mubr.msk.f32.gmra.mrb[134].mxu0 %vm367_vm0, %v3697_v16  ;;  %v3709_v8 = vld [vmem:[%s3935_s3 + $0x178] sm:$0xff] }
 0x15e   : > { %2280 = vst [vmem:[%s4830_s28 + $0x2a8] sm:$0xff] %v1000_v19  ;;  %2472 = vst [vmem:[%s4830_s28 + $0x8a8] sm:$0xff] %v1192_v25  ;;  %3260 = vmatprep.mubr.msk.f32.mxu1 %vm367_vm0, %v3698_v35  ;;  %3420 = vmatprep.mubr.msk.f32.mxu0 %vm367_vm0, %v3698_v35 }
 0x160   : > { %v1004_v41 = vpop.f32.mrb[30].mxu0  ;;  %v1196_v51 = vpop.f32.mrb[30].mxu1 }
 0x161   : > { %2285 = vst [vmem:[%s4830_s28 + $0x2d0] sm:$0xff] %v1004_v41  ;;  %2477 = vst [vmem:[%s4830_s28 + $0x8d0] sm:$0xff] %v1196_v51  ;;  %v1006_v57 = vpop.f32.mrb[31].mxu0  ;;  %v1198_v5 = vpop.f32.mrb[31].mxu1  ;;  %3261 = vmatmul.mubr.msk.f32.gmra.mrb[136].mxu1 %vm367_vm0, %v3698_v35  ;;  %3421 = vmatmul.mubr.msk.f32.gmra.mrb[136].mxu0 %vm367_vm0, %v3698_v35  ;;  %v3710_v41 = vld [vmem:[%s3935_s3 + $0x180] sm:$0xff]  ;;  %v3711_v51 = vld [vmem:[%s3935_s3 + $0x188] sm:$0xff] }
 0x162   : > { %2286 = vst [vmem:[%s4830_s28 + $0x2d8] sm:$0xff] %v1006_v57  ;;  %2478 = vst [vmem:[%s4830_s28 + $0x8d8] sm:$0xff] %v1198_v5  ;;  %3262 = vmatprep.mubr.msk.f32.mxu1 %vm367_vm0, %v3699_v12  ;;  %3422 = vmatprep.mubr.msk.f32.mxu0 %vm367_vm0, %v3699_v12 }
 0x164   : > { %v1010_v24 = vpop.f32.mrb[32].mxu0  ;;  %v1202_v31 = vpop.f32.mrb[32].mxu1 }
 0x165   : > { %2291 = vst [vmem:[%s4830_s28 + $0x300] sm:$0xff] %v1010_v24  ;;  %2483 = vst [vmem:[%s4830_s28 + $0x900] sm:$0xff] %v1202_v31  ;;  %v1012_v40 = vpop.f32.mrb[33].mxu0  ;;  %v1204_v42 = vpop.f32.mrb[33].mxu1  ;;  %3263 = vmatmul.mubr.msk.f32.gmra.mrb[138].mxu1 %vm367_vm0, %v3699_v12  ;;  %3423 = vmatmul.mubr.msk.f32.gmra.mrb[138].mxu0 %vm367_vm0, %v3699_v12  ;;  %v3712_v24 = vld [vmem:[%s3935_s3 + $0x190] sm:$0xff] }
 0x166   : > { %2292 = vst [vmem:[%s4830_s28 + $0x308] sm:$0xff] %v1012_v40  ;;  %2484 = vst [vmem:[%s4830_s28 + $0x908] sm:$0xff] %v1204_v42  ;;  %3264 = vmatprep.mubr.msk.f32.mxu1 %vm367_vm0, %v3700_v43  ;;  %3424 = vmatprep.mubr.msk.f32.mxu0 %vm367_vm0, %v3700_v43 }
 0x168   : > { %v1016_v45 = vpop.f32.mrb[34].mxu0  ;;  %v1208_v46 = vpop.f32.mrb[34].mxu1 }
 0x169   : > { %2297 = vst [vmem:[%s4830_s28 + $0x330] sm:$0xff] %v1016_v45  ;;  %2489 = vst [vmem:[%s4830_s28 + $0x930] sm:$0xff] %v1208_v46  ;;  %v1018_v47 = vpop.f32.mrb[35].mxu0  ;;  %v1210_v48 = vpop.f32.mrb[35].mxu1  ;;  %3265 = vmatmul.mubr.msk.f32.gmra.mrb[140].mxu1 %vm367_vm0, %v3700_v43  ;;  %3425 = vmatmul.mubr.msk.f32.gmra.mrb[140].mxu0 %vm367_vm0, %v3700_v43  ;;  %v3713_v45 = vld [vmem:[%s3935_s3 + $0x198] sm:$0xff] }
 0x16a   : > { %2298 = vst [vmem:[%s4830_s28 + $0x338] sm:$0xff] %v1018_v47  ;;  %2490 = vst [vmem:[%s4830_s28 + $0x938] sm:$0xff] %v1210_v48  ;;  %3266 = vmatprep.mubr.msk.f32.mxu1 %vm367_vm0, %v3701_v49  ;;  %3426 = vmatprep.mubr.msk.f32.mxu0 %vm367_vm0, %v3701_v49 }
 0x16c   : > { %v1022_v52 = vpop.f32.mrb[36].mxu0  ;;  %v1214_v53 = vpop.f32.mrb[36].mxu1 }
 0x16d   : > { %2303 = vst [vmem:[%s4830_s28 + $0x360] sm:$0xff] %v1022_v52  ;;  %2495 = vst [vmem:[%s4830_s28 + $0x960] sm:$0xff] %v1214_v53  ;;  %v1024_v54 = vpop.f32.mrb[37].mxu0  ;;  %v1216_v55 = vpop.f32.mrb[37].mxu1  ;;  %3267 = vmatmul.mubr.msk.f32.gmra.mrb[142].mxu1 %vm367_vm0, %v3701_v49  ;;  %3427 = vmatmul.mubr.msk.f32.gmra.mrb[142].mxu0 %vm367_vm0, %v3701_v49  ;;  %v3714_v52 = vld [vmem:[%s3935_s3 + $0x1a0] sm:$0xff] }
 0x16e   : > { %2304 = vst [vmem:[%s4830_s28 + $0x368] sm:$0xff] %v1024_v54  ;;  %2496 = vst [vmem:[%s4830_s28 + $0x968] sm:$0xff] %v1216_v55  ;;  %3268 = vmatprep.mubr.msk.f32.mxu1 %vm367_vm0, %v3702_v56  ;;  %3428 = vmatprep.mubr.msk.f32.mxu0 %vm367_vm0, %v3702_v56 }
 0x170   : > { %v1028_v59 = vpop.f32.mrb[38].mxu0  ;;  %v1220_v60 = vpop.f32.mrb[38].mxu1 }
 0x171   : > { %2309 = vst [vmem:[%s4830_s28 + $0x390] sm:$0xff] %v1028_v59  ;;  %2501 = vst [vmem:[%s4830_s28 + $0x990] sm:$0xff] %v1220_v60  ;;  %v1030_v61 = vpop.f32.mrb[39].mxu0  ;;  %v1222_v63 = vpop.f32.mrb[39].mxu1  ;;  %3269 = vmatmul.mubr.msk.f32.gmra.mrb[144].mxu1 %vm367_vm0, %v3702_v56  ;;  %3429 = vmatmul.mubr.msk.f32.gmra.mrb[144].mxu0 %vm367_vm0, %v3702_v56  ;;  %v3715_v59 = vld [vmem:[%s3935_s3 + $0x1a8] sm:$0xff] }
 0x172   : > { %2310 = vst [vmem:[%s4830_s28 + $0x398] sm:$0xff] %v1030_v61  ;;  %2502 = vst [vmem:[%s4830_s28 + $0x998] sm:$0xff] %v1222_v63  ;;  %3270 = vmatprep.mubr.msk.f32.mxu1 %vm367_vm0, %v3703_v0  ;;  %3430 = vmatprep.mubr.msk.f32.mxu0 %vm367_vm0, %v3703_v0 }
 0x174   : > { %v1034_v4 = vpop.f32.mrb[40].mxu0  ;;  %v1226_v1 = vpop.f32.mrb[40].mxu1 }
 0x175   : > { %2315 = vst [vmem:[%s4830_s28 + $0x3c0] sm:$0xff] %v1034_v4  ;;  %2507 = vst [vmem:[%s4830_s28 + $0x9c0] sm:$0xff] %v1226_v1  ;;  %v1036_v2 = vpop.f32.mrb[41].mxu0  ;;  %v1228_v6 = vpop.f32.mrb[41].mxu1  ;;  %3271 = vmatmul.mubr.msk.f32.gmra.mrb[146].mxu1 %vm367_vm0, %v3703_v0  ;;  %3431 = vmatmul.mubr.msk.f32.gmra.mrb[146].mxu0 %vm367_vm0, %v3703_v0  ;;  %v3716_v4 = vld [vmem:[%s3935_s3 + $0x1b0] sm:$0xff] }
 0x176   : > { %2316 = vst [vmem:[%s4830_s28 + $0x3c8] sm:$0xff] %v1036_v2  ;;  %2508 = vst [vmem:[%s4830_s28 + $0x9c8] sm:$0xff] %v1228_v6  ;;  %3272 = vmatprep.mubr.msk.f32.mxu1 %vm367_vm0, %v3704_v7  ;;  %3432 = vmatprep.mubr.msk.f32.mxu0 %vm367_vm0, %v3704_v7 }
 0x178   : > { %v1040_v9 = vpop.f32.mrb[42].mxu0  ;;  %v1232_v10 = vpop.f32.mrb[42].mxu1 }
 0x179   : > { %2321 = vst [vmem:[%s4830_s28 + $0x3f0] sm:$0xff] %v1040_v9  ;;  %2513 = vst [vmem:[%s4830_s28 + $0x9f0] sm:$0xff] %v1232_v10  ;;  %v1042_v11 = vpop.f32.mrb[43].mxu0  ;;  %v1234_v13 = vpop.f32.mrb[43].mxu1  ;;  %3273 = vmatmul.mubr.msk.f32.gmra.mrb[148].mxu1 %vm367_vm0, %v3704_v7  ;;  %3433 = vmatmul.mubr.msk.f32.gmra.mrb[148].mxu0 %vm367_vm0, %v3704_v7  ;;  %v3717_v9 = vld [vmem:[%s3935_s3 + $0x1b8] sm:$0xff] }
 0x17a   : > { %2322 = vst [vmem:[%s4830_s28 + $0x3f8] sm:$0xff] %v1042_v11  ;;  %2514 = vst [vmem:[%s4830_s28 + $0x9f8] sm:$0xff] %v1234_v13  ;;  %3274 = vmatprep.mubr.msk.f32.mxu1 %vm367_vm0, %v4370_v26  ;;  %3434 = vmatprep.mubr.msk.f32.mxu0 %vm367_vm0, %v4370_v26 }
 0x17c   : > { %v1046_v14 = vpop.f32.mrb[44].mxu0  ;;  %v1238_v15 = vpop.f32.mrb[44].mxu1 }
 0x17d   : > { %2327 = vst [vmem:[%s4830_s28 + $0x420] sm:$0xff] %v1046_v14  ;;  %2519 = vst [vmem:[%s4830_s28 + $0xa20] sm:$0xff] %v1238_v15  ;;  %v1048_v17 = vpop.f32.mrb[45].mxu0  ;;  %v1240_v18 = vpop.f32.mrb[45].mxu1  ;;  %3275 = vmatmul.mubr.msk.f32.gmra.mrb[150].mxu1 %vm367_vm0, %v3705_v20  ;;  %3435 = vmatmul.mubr.msk.f32.gmra.mrb[150].mxu0 %vm367_vm0, %v3705_v20  ;;  %v3718_v15 = vld [vmem:[%s3935_s3 + $0x1c0] sm:$0xff] }
 0x17e   : > { %2328 = vst [vmem:[%s4830_s28 + $0x428] sm:$0xff] %v1048_v17  ;;  %2520 = vst [vmem:[%s4830_s28 + $0xa28] sm:$0xff] %v1240_v18  ;;  %3276 = vmatprep.mubr.msk.f32.mxu1 %vm367_vm0, %v3706_v21  ;;  %3436 = vmatprep.mubr.msk.f32.mxu0 %vm367_vm0, %v3706_v21 }
 0x180   : > { %v1052_v26 = vpop.f32.mrb[46].mxu0  ;;  %v1244_v22 = vpop.f32.mrb[46].mxu1 }
 0x181   : > { %2333 = vst [vmem:[%s4830_s28 + $0x450] sm:$0xff] %v1052_v26  ;;  %2525 = vst [vmem:[%s4830_s28 + $0xa50] sm:$0xff] %v1244_v22  ;;  %v1054_v23 = vpop.f32.mrb[47].mxu0  ;;  %v1246_v27 = vpop.f32.mrb[47].mxu1  ;;  %3277 = vmatmul.mubr.msk.f32.gmra.mrb[152].mxu1 %vm367_vm0, %v3706_v21  ;;  %3437 = vmatmul.mubr.msk.f32.gmra.mrb[152].mxu0 %vm367_vm0, %v3706_v21  ;;  %v3719_v26 = vld [vmem:[%s3935_s3 + $0x1c8] sm:$0xff] }
 0x182   : > { %2334 = vst [vmem:[%s4830_s28 + $0x458] sm:$0xff] %v1054_v23  ;;  %2526 = vst [vmem:[%s4830_s28 + $0xa58] sm:$0xff] %v1246_v27  ;;  %3278 = vmatprep.mubr.msk.f32.mxu1 %vm367_vm0, %v4426_v44  ;;  %3438 = vmatprep.mubr.msk.f32.mxu0 %vm367_vm0, %v4426_v44 }
 0x184   : > { %v1058_v28 = vpop.f32.mrb[48].mxu0  ;;  %v1250_v29 = vpop.f32.mrb[48].mxu1 }
 0x185   : > { %2339 = vst [vmem:[%s4830_s28 + $0x480] sm:$0xff] %v1058_v28  ;;  %2531 = vst [vmem:[%s4830_s28 + $0xa80] sm:$0xff] %v1250_v29  ;;  %v1060_v30 = vpop.f32.mrb[49].mxu0  ;;  %v1252_v32 = vpop.f32.mrb[49].mxu1  ;;  %3279 = vmatmul.mubr.msk.f32.gmra.mrb[154].mxu1 %vm367_vm0, %v3707_v33  ;;  %3439 = vmatmul.mubr.msk.f32.gmra.mrb[154].mxu0 %vm367_vm0, %v3707_v33  ;;  %v3720_v29 = vld [vmem:[%s3935_s3 + $0x1d0] sm:$0xff] }
 0x186   : > { %2340 = vst [vmem:[%s4830_s28 + $0x488] sm:$0xff] %v1060_v30  ;;  %2532 = vst [vmem:[%s4830_s28 + $0xa88] sm:$0xff] %v1252_v32  ;;  %3280 = vmatprep.mubr.msk.f32.mxu1 %vm367_vm0, %v4439_v50  ;;  %3440 = vmatprep.mubr.msk.f32.mxu0 %vm367_vm0, %v4439_v50 }
 0x188   : > { %v1064_v44 = vpop.f32.mrb[50].mxu0  ;;  %v1256_v34 = vpop.f32.mrb[50].mxu1 }
 0x189   : > { %2345 = vst [vmem:[%s4830_s28 + $0x4b0] sm:$0xff] %v1064_v44  ;;  %2537 = vst [vmem:[%s4830_s28 + $0xab0] sm:$0xff] %v1256_v34  ;;  %v1066_v36 = vpop.f32.mrb[51].mxu0  ;;  %v1258_v37 = vpop.f32.mrb[51].mxu1  ;;  %3281 = vmatmul.mubr.msk.f32.gmra.mrb[156].mxu1 %vm367_vm0, %v3708_v38  ;;  %3441 = vmatmul.mubr.msk.f32.gmra.mrb[156].mxu0 %vm367_vm0, %v3708_v38  ;;  %v3721_v34 = vld [vmem:[%s3935_s3 + $0x1d8] sm:$0xff] }
 0x18a   : > { %2346 = vst [vmem:[%s4830_s28 + $0x4b8] sm:$0xff] %v1066_v36  ;;  %2538 = vst [vmem:[%s4830_s28 + $0xab8] sm:$0xff] %v1258_v37  ;;  %3282 = vmatprep.mubr.msk.f32.mxu1 %vm367_vm0, %v4473_v58  ;;  %3442 = vmatprep.mubr.msk.f32.mxu0 %vm367_vm0, %v4473_v58 }
 0x18c   : > { %v1070_v50 = vpop.f32.mrb[52].mxu0  ;;  %v1262_v39 = vpop.f32.mrb[52].mxu1 }
 0x18d   : > { %2351 = vst [vmem:[%s4830_s28 + $0x4e0] sm:$0xff] %v1070_v50  ;;  %2543 = vst [vmem:[%s4830_s28 + $0xae0] sm:$0xff] %v1262_v39  ;;  %v1072_v16 = vpop.f32.mrb[53].mxu0  ;;  %v1264_v3 = vpop.f32.mrb[53].mxu1  ;;  %3283 = vmatmul.mubr.msk.f32.gmra.mrb[158].mxu1 %vm367_vm0, %v3709_v8  ;;  %3443 = vmatmul.mubr.msk.f32.gmra.mrb[158].mxu0 %vm367_vm0, %v3709_v8  ;;  %v3722_v39 = vld [vmem:[%s3935_s3 + $0x1e0] sm:$0xff] }
 0x18e   : > { %2352 = vst [vmem:[%s4830_s28 + $0x4e8] sm:$0xff] %v1072_v16  ;;  %2544 = vst [vmem:[%s4830_s28 + $0xae8] sm:$0xff] %v1264_v3  ;;  %3284 = vmatprep.mubr.msk.f32.mxu1 %vm367_vm0, %v4487_v62  ;;  %3444 = vmatprep.mubr.msk.f32.mxu0 %vm367_vm0, %v4487_v62 }
 0x190   : > { %v1076_v58 = vpop.f32.mrb[54].mxu0  ;;  %v1268_v19 = vpop.f32.mrb[54].mxu1 }
 0x191   : > { %2357 = vst [vmem:[%s4830_s28 + $0x510] sm:$0xff] %v1076_v58  ;;  %2549 = vst [vmem:[%s4830_s28 + $0xb10] sm:$0xff] %v1268_v19  ;;  %v1078_v25 = vpop.f32.mrb[55].mxu0  ;;  %v1270_v35 = vpop.f32.mrb[55].mxu1  ;;  %3285 = vmatmul.mubr.msk.f32.gmra.mrb[160].mxu1 %vm367_vm0, %v3710_v41  ;;  %3445 = vmatmul.mubr.msk.f32.gmra.mrb[160].mxu0 %vm367_vm0, %v3710_v41  ;;  %v3723_v19 = vld [vmem:[%s3935_s3 + $0x1e8] sm:$0xff] }
 0x192   : > { %2358 = vst [vmem:[%s4830_s28 + $0x518] sm:$0xff] %v1078_v25  ;;  %2550 = vst [vmem:[%s4830_s28 + $0xb18] sm:$0xff] %v1270_v35  ;;  %3286 = vmatprep.mubr.msk.f32.mxu1 %vm367_vm0, %v3711_v51  ;;  %3446 = vmatprep.mubr.msk.f32.mxu0 %vm367_vm0, %v3711_v51 }
 0x194   : > { %v1082_v62 = vpop.f32.mrb[56].mxu0  ;;  %v1274_v57 = vpop.f32.mrb[56].mxu1 }
 0x195   : > { %2363 = vst [vmem:[%s4830_s28 + $0x540] sm:$0xff] %v1082_v62  ;;  %2555 = vst [vmem:[%s4830_s28 + $0xb40] sm:$0xff] %v1274_v57  ;;  %v1084_v5 = vpop.f32.mrb[57].mxu0  ;;  %v1276_v12 = vpop.f32.mrb[57].mxu1  ;;  %3287 = vmatmul.mubr.msk.f32.gmra.mrb[162].mxu1 %vm367_vm0, %v3711_v51  ;;  %3447 = vmatmul.mubr.msk.f32.gmra.mrb[162].mxu0 %vm367_vm0, %v3711_v51  ;;  %v3724_v62 = vld [vmem:[%s3935_s3 + $0x1f0] sm:$0xff] }
 0x196   : > { %2364 = vst [vmem:[%s4830_s28 + $0x548] sm:$0xff] %v1084_v5  ;;  %2556 = vst [vmem:[%s4830_s28 + $0xb48] sm:$0xff] %v1276_v12  ;;  %3288 = vmatprep.mubr.msk.f32.mxu1 %vm367_vm0, %v3712_v24  ;;  %3448 = vmatprep.mubr.msk.f32.mxu0 %vm367_vm0, %v3712_v24 }
 0x198   : > { %v1088_v31 = vpop.f32.mrb[58].mxu0  ;;  %v1280_v40 = vpop.f32.mrb[58].mxu1 }
 0x199   : > { %2369 = vst [vmem:[%s4830_s28 + $0x570] sm:$0xff] %v1088_v31  ;;  %2561 = vst [vmem:[%s4830_s28 + $0xb70] sm:$0xff] %v1280_v40  ;;  %v1090_v42 = vpop.f32.mrb[59].mxu0  ;;  %v1282_v43 = vpop.f32.mrb[59].mxu1  ;;  %3289 = vmatmul.mubr.msk.f32.gmra.mrb[164].mxu1 %vm367_vm0, %v3712_v24  ;;  %3449 = vmatmul.mubr.msk.f32.gmra.mrb[164].mxu0 %vm367_vm0, %v3712_v24  ;;  %v3725_v31 = vld [vmem:[%s3935_s3 + $0x1f8] sm:$0xff]  ;;  %s5472_s3 = scalar_lea.sflag [#allocation3], %s177_s26 }
 0x19a   : > { %2370 = vst [vmem:[%s4830_s28 + $0x578] sm:$0xff] %v1090_v42  ;;  %2562 = vst [vmem:[%s4830_s28 + $0xb78] sm:$0xff] %v1282_v43  ;;  %3290 = vmatprep.mubr.msk.f32.mxu1 %vm367_vm0, %v3713_v45  ;;  %3450 = vmatprep.mubr.msk.f32.mxu0 %vm367_vm0, %v3713_v45 }
 0x19c   : > { %v1094_v46 = vpop.f32.mrb[60].mxu0  ;;  %v1286_v47 = vpop.f32.mrb[60].mxu1 }
 0x19d   : > { %2375 = vst [vmem:[%s4830_s28 + $0x5a0] sm:$0xff] %v1094_v46  ;;  %2567 = vst [vmem:[%s4830_s28 + $0xba0] sm:$0xff] %v1286_v47  ;;  %v1096_v48 = vpop.f32.mrb[61].mxu0  ;;  %v1288_v49 = vpop.f32.mrb[61].mxu1  ;;  %3291 = vmatmul.mubr.msk.f32.gmra.mrb[166].mxu1 %vm367_vm0, %v3713_v45  ;;  %3451 = vmatmul.mubr.msk.f32.gmra.mrb[166].mxu0 %vm367_vm0, %v3713_v45 }
 0x19e   : > { %2376 = vst [vmem:[%s4830_s28 + $0x5a8] sm:$0xff] %v1096_v48  ;;  %2568 = vst [vmem:[%s4830_s28 + $0xba8] sm:$0xff] %v1288_v49  ;;  %3292 = vmatprep.mubr.msk.f32.mxu1 %vm367_vm0, %v3714_v52  ;;  %3452 = vmatprep.mubr.msk.f32.mxu0 %vm367_vm0, %v3714_v52 }
 0x1a0   : > { %v1100_v53 = vpop.f32.mrb[62].mxu0  ;;  %v1292_v54 = vpop.f32.mrb[62].mxu1 }
 0x1a1   : > { %2381 = vst [vmem:[%s4830_s28 + $0x5d0] sm:$0xff] %v1100_v53  ;;  %2573 = vst [vmem:[%s4830_s28 + $0xbd0] sm:$0xff] %v1292_v54  ;;  %v1102_v55 = vpop.f32.mrb[63].mxu0  ;;  %v1294_v56 = vpop.f32.mrb[63].mxu1  ;;  %3293 = vmatmul.mubr.msk.f32.gmra.mrb[168].mxu1 %vm367_vm0, %v3714_v52  ;;  %3453 = vmatmul.mubr.msk.f32.gmra.mrb[168].mxu0 %vm367_vm0, %v3714_v52 }
 0x1a2   : > { %2382 = vst [vmem:[%s4830_s28 + $0x5d8] sm:$0xff] %v1102_v55  ;;  %2574 = vst [vmem:[%s4830_s28 + $0xbd8] sm:$0xff] %v1294_v56  ;;  %3294 = vmatprep.mubr.msk.f32.mxu1 %vm367_vm0, %v3715_v59  ;;  %3454 = vmatprep.mubr.msk.f32.mxu0 %vm367_vm0, %v3715_v59 }
 0x1a4   : > { %v1363_v60 = vpop.f32.mrb[64].mxu1  ;;  %v1812_v61 = vpop.f32.mrb[64].mxu0 }
 0x1a5   : > { %2197 = vst [vmem:[%s4830_s28 + $0x10] sm:$0xff] %v1363_v60  ;;  %2199 = vst [vmem:[%s4830_s28 + $0x20] sm:$0xff] %v1812_v61  ;;  %v1365_v63 = vpop.f32.mrb[65].mxu1  ;;  %3295 = vmatmul.mubr.msk.f32.gmra.mrb[170].mxu1 %vm367_vm0, %v3715_v59  ;;  %v1814_v0 = vpop.f32.mrb[65].mxu0  ;;  %3455 = vmatmul.mubr.msk.f32.gmra.mrb[170].mxu0 %vm367_vm0, %v3715_v59 }
 0x1a6   : > { %2198 = vst [vmem:[%s4830_s28 + $0x18] sm:$0xff] %v1365_v63  ;;  %2200 = vst [vmem:[%s4830_s28 + $0x28] sm:$0xff] %v1814_v0  ;;  %3296 = vmatprep.mubr.msk.f32.mxu1 %vm367_vm0, %v3716_v4  ;;  %3456 = vmatprep.mubr.msk.f32.mxu0 %vm367_vm0, %v3716_v4 }
 0x1a8   : > { %v1369_v1 = vpop.f32.mrb[66].mxu1  ;;  %v1818_v2 = vpop.f32.mrb[66].mxu0 }
 0x1a9   : > { %2203 = vst [vmem:[%s4830_s28 + $0x40] sm:$0xff] %v1369_v1  ;;  %2205 = vst [vmem:[%s4830_s28 + $0x50] sm:$0xff] %v1818_v2  ;;  %v1371_v6 = vpop.f32.mrb[67].mxu1  ;;  %3297 = vmatmul.mubr.msk.f32.gmra.mrb[172].mxu1 %vm367_vm0, %v3716_v4  ;;  %v1820_v7 = vpop.f32.mrb[67].mxu0  ;;  %3457 = vmatmul.mubr.msk.f32.gmra.mrb[172].mxu0 %vm367_vm0, %v3716_v4 }
 0x1aa   : > { %2204 = vst [vmem:[%s4830_s28 + $0x48] sm:$0xff] %v1371_v6  ;;  %2206 = vst [vmem:[%s4830_s28 + $0x58] sm:$0xff] %v1820_v7  ;;  %3298 = vmatprep.mubr.msk.f32.mxu1 %vm367_vm0, %v3717_v9  ;;  %3458 = vmatprep.mubr.msk.f32.mxu0 %vm367_vm0, %v3717_v9 }
 0x1ac   : > { %v1375_v10 = vpop.f32.mrb[68].mxu1  ;;  %v1824_v11 = vpop.f32.mrb[68].mxu0 }
 0x1ad   : > { %2209 = vst [vmem:[%s4830_s28 + $0x70] sm:$0xff] %v1375_v10  ;;  %2211 = vst [vmem:[%s4830_s28 + $0x80] sm:$0xff] %v1824_v11  ;;  %v1377_v13 = vpop.f32.mrb[69].mxu1  ;;  %3299 = vmatmul.mubr.msk.f32.gmra.mrb[174].mxu1 %vm367_vm0, %v3717_v9  ;;  %v1826_v14 = vpop.f32.mrb[69].mxu0  ;;  %3459 = vmatmul.mubr.msk.f32.gmra.mrb[174].mxu0 %vm367_vm0, %v3717_v9 }
 0x1ae   : > { %2210 = vst [vmem:[%s4830_s28 + $0x78] sm:$0xff] %v1377_v13  ;;  %2212 = vst [vmem:[%s4830_s28 + $0x88] sm:$0xff] %v1826_v14  ;;  %3300 = vmatprep.mubr.msk.f32.mxu1 %vm367_vm0, %v3718_v15  ;;  %3460 = vmatprep.mubr.msk.f32.mxu0 %vm367_vm0, %v3718_v15 }
 0x1b0   : > { %v1381_v17 = vpop.f32.mrb[70].mxu1  ;;  %v1830_v18 = vpop.f32.mrb[70].mxu0 }
 0x1b1   : > { %2215 = vst [vmem:[%s4830_s28 + $0xa0] sm:$0xff] %v1381_v17  ;;  %2217 = vst [vmem:[%s4830_s28 + $0xb0] sm:$0xff] %v1830_v18  ;;  %v1383_v20 = vpop.f32.mrb[71].mxu1  ;;  %3301 = vmatmul.mubr.msk.f32.gmra.mrb[176].mxu1 %vm367_vm0, %v3718_v15  ;;  %v1832_v21 = vpop.f32.mrb[71].mxu0  ;;  %3461 = vmatmul.mubr.msk.f32.gmra.mrb[176].mxu0 %vm367_vm0, %v3718_v15 }
 0x1b2   : > { %2216 = vst [vmem:[%s4830_s28 + $0xa8] sm:$0xff] %v1383_v20  ;;  %2218 = vst [vmem:[%s4830_s28 + $0xb8] sm:$0xff] %v1832_v21  ;;  %3302 = vmatprep.mubr.msk.f32.mxu1 %vm367_vm0, %v3719_v26  ;;  %3462 = vmatprep.mubr.msk.f32.mxu0 %vm367_vm0, %v3719_v26 }
 0x1b4   : > { %v1387_v22 = vpop.f32.mrb[72].mxu1  ;;  %v1836_v23 = vpop.f32.mrb[72].mxu0 }
 0x1b5   : > { %2221 = vst [vmem:[%s4830_s28 + $0xd0] sm:$0xff] %v1387_v22  ;;  %2223 = vst [vmem:[%s4830_s28 + $0xe0] sm:$0xff] %v1836_v23  ;;  %v1389_v27 = vpop.f32.mrb[73].mxu1  ;;  %3303 = vmatmul.mubr.msk.f32.gmra.mrb[178].mxu1 %vm367_vm0, %v3719_v26  ;;  %v1838_v28 = vpop.f32.mrb[73].mxu0  ;;  %3463 = vmatmul.mubr.msk.f32.gmra.mrb[178].mxu0 %vm367_vm0, %v3719_v26 }
 0x1b6   : > { %2222 = vst [vmem:[%s4830_s28 + $0xd8] sm:$0xff] %v1389_v27  ;;  %2224 = vst [vmem:[%s4830_s28 + $0xe8] sm:$0xff] %v1838_v28  ;;  %3304 = vmatprep.mubr.msk.f32.mxu1 %vm367_vm0, %v3720_v29  ;;  %3464 = vmatprep.mubr.msk.f32.mxu0 %vm367_vm0, %v3720_v29 }
 0x1b8   : > { %v1393_v30 = vpop.f32.mrb[74].mxu1  ;;  %v1842_v32 = vpop.f32.mrb[74].mxu0 }
 0x1b9   : > { %2227 = vst [vmem:[%s4830_s28 + $0x100] sm:$0xff] %v1393_v30  ;;  %2229 = vst [vmem:[%s4830_s28 + $0x110] sm:$0xff] %v1842_v32  ;;  %v1395_v33 = vpop.f32.mrb[75].mxu1  ;;  %3305 = vmatmul.mubr.msk.f32.gmra.mrb[180].mxu1 %vm367_vm0, %v3720_v29  ;;  %v1844_v44 = vpop.f32.mrb[75].mxu0  ;;  %3465 = vmatmul.mubr.msk.f32.gmra.mrb[180].mxu0 %vm367_vm0, %v3720_v29 }
 0x1ba   : > { %2228 = vst [vmem:[%s4830_s28 + $0x108] sm:$0xff] %v1395_v33  ;;  %2230 = vst [vmem:[%s4830_s28 + $0x118] sm:$0xff] %v1844_v44  ;;  %3306 = vmatprep.mubr.msk.f32.mxu1 %vm367_vm0, %v3721_v34  ;;  %3466 = vmatprep.mubr.msk.f32.mxu0 %vm367_vm0, %v3721_v34 }
 0x1bc   : > { %v1399_v36 = vpop.f32.mrb[76].mxu1  ;;  %v1848_v37 = vpop.f32.mrb[76].mxu0 }
 0x1bd   : > { %2233 = vst [vmem:[%s4830_s28 + $0x130] sm:$0xff] %v1399_v36  ;;  %2235 = vst [vmem:[%s4830_s28 + $0x140] sm:$0xff] %v1848_v37  ;;  %v1401_v38 = vpop.f32.mrb[77].mxu1  ;;  %3307 = vmatmul.mubr.msk.f32.gmra.mrb[182].mxu1 %vm367_vm0, %v3721_v34  ;;  %v1850_v50 = vpop.f32.mrb[77].mxu0  ;;  %3467 = vmatmul.mubr.msk.f32.gmra.mrb[182].mxu0 %vm367_vm0, %v3721_v34 }
 0x1be   : > { %2234 = vst [vmem:[%s4830_s28 + $0x138] sm:$0xff] %v1401_v38  ;;  %2236 = vst [vmem:[%s4830_s28 + $0x148] sm:$0xff] %v1850_v50  ;;  %3308 = vmatprep.mubr.msk.f32.mxu1 %vm367_vm0, %v3722_v39  ;;  %3468 = vmatprep.mubr.msk.f32.mxu0 %vm367_vm0, %v3722_v39 }
 0x1c0   : > { %v1405_v16 = vpop.f32.mrb[78].mxu1  ;;  %v1854_v3 = vpop.f32.mrb[78].mxu0 }
 0x1c1   : > { %2239 = vst [vmem:[%s4830_s28 + $0x160] sm:$0xff] %v1405_v16  ;;  %2241 = vst [vmem:[%s4830_s28 + $0x170] sm:$0xff] %v1854_v3  ;;  %v1407_v8 = vpop.f32.mrb[79].mxu1  ;;  %3309 = vmatmul.mubr.msk.f32.gmra.mrb[184].mxu1 %vm367_vm0, %v3722_v39  ;;  %v1856_v58 = vpop.f32.mrb[79].mxu0  ;;  %3469 = vmatmul.mubr.msk.f32.gmra.mrb[184].mxu0 %vm367_vm0, %v3722_v39 }
 0x1c2   : > { %2240 = vst [vmem:[%s4830_s28 + $0x168] sm:$0xff] %v1407_v8  ;;  %2242 = vst [vmem:[%s4830_s28 + $0x178] sm:$0xff] %v1856_v58  ;;  %3310 = vmatprep.mubr.msk.f32.mxu1 %vm367_vm0, %v3723_v19  ;;  %3470 = vmatprep.mubr.msk.f32.mxu0 %vm367_vm0, %v3723_v19 }
 0x1c4   : > { %v1411_v25 = vpop.f32.mrb[80].mxu1  ;;  %v1860_v35 = vpop.f32.mrb[80].mxu0 }
 0x1c5   : > { %2245 = vst [vmem:[%s4830_s28 + $0x190] sm:$0xff] %v1411_v25  ;;  %2247 = vst [vmem:[%s4830_s28 + $0x1a0] sm:$0xff] %v1860_v35  ;;  %v1413_v41 = vpop.f32.mrb[81].mxu1  ;;  %3311 = vmatmul.mubr.msk.f32.gmra.mrb[186].mxu1 %vm367_vm0, %v3723_v19  ;;  %v1862_v51 = vpop.f32.mrb[81].mxu0  ;;  %3471 = vmatmul.mubr.msk.f32.gmra.mrb[186].mxu0 %vm367_vm0, %v3723_v19 }
 0x1c6   : > { %2246 = vst [vmem:[%s4830_s28 + $0x198] sm:$0xff] %v1413_v41  ;;  %2248 = vst [vmem:[%s4830_s28 + $0x1a8] sm:$0xff] %v1862_v51  ;;  %3312 = vmatprep.mubr.msk.f32.mxu1 %vm367_vm0, %v3724_v62  ;;  %3472 = vmatprep.mubr.msk.f32.mxu0 %vm367_vm0, %v3724_v62 }
 0x1c8   : > { %v1417_v57 = vpop.f32.mrb[82].mxu1  ;;  %v1866_v5 = vpop.f32.mrb[82].mxu0 }
 0x1c9   : > { %2251 = vst [vmem:[%s4830_s28 + $0x1c0] sm:$0xff] %v1417_v57  ;;  %2253 = vst [vmem:[%s4830_s28 + $0x1d0] sm:$0xff] %v1866_v5  ;;  %v1419_v12 = vpop.f32.mrb[83].mxu1  ;;  %3313 = vmatmul.mubr.msk.f32.gmra.mrb[188].mxu1 %vm367_vm0, %v3724_v62  ;;  %v1868_v24 = vpop.f32.mrb[83].mxu0  ;;  %3473 = vmatmul.mubr.msk.f32.gmra.mrb[188].mxu0 %vm367_vm0, %v3724_v62 }
 0x1ca   : > { %2252 = vst [vmem:[%s4830_s28 + $0x1c8] sm:$0xff] %v1419_v12  ;;  %2254 = vst [vmem:[%s4830_s28 + $0x1d8] sm:$0xff] %v1868_v24  ;;  %3314 = vmatprep.mubr.msk.f32.mxu1 %vm367_vm0, %v3725_v31  ;;  %3474 = vmatprep.mubr.msk.f32.mxu0 %vm367_vm0, %v3725_v31 }
 0x1cc   : > { %v1423_v40 = vpop.f32.mrb[84].mxu1  ;;  %v1872_v42 = vpop.f32.mrb[84].mxu0 }
 0x1cd   : > { %2257 = vst [vmem:[%s4830_s28 + $0x1f0] sm:$0xff] %v1423_v40  ;;  %2259 = vst [vmem:[%s4830_s28 + $0x200] sm:$0xff] %v1872_v42  ;;  %v1425_v43 = vpop.f32.mrb[85].mxu1  ;;  %3315 = vmatmul.mubr.msk.f32.gmra.mrb[190].mxu1 %vm367_vm0, %v3725_v31  ;;  %v1874_v45 = vpop.f32.mrb[85].mxu0  ;;  %3475 = vmatmul.mubr.msk.f32.gmra.mrb[190].mxu0 %vm367_vm0, %v3725_v31 }
 0x1ce   : > { %2258 = vst [vmem:[%s4830_s28 + $0x1f8] sm:$0xff] %v1425_v43  ;;  %2260 = vst [vmem:[%s4830_s28 + $0x208] sm:$0xff] %v1874_v45 }
 0x1d0   : > { %v1429_v46 = vpop.f32.mrb[86].mxu1  ;;  %v1878_v47 = vpop.f32.mrb[86].mxu0 }
 0x1d1   : > { %2263 = vst [vmem:[%s4830_s28 + $0x220] sm:$0xff] %v1429_v46  ;;  %2265 = vst [vmem:[%s4830_s28 + $0x230] sm:$0xff] %v1878_v47  ;;  %v1431_v48 = vpop.f32.mrb[87].mxu1  ;;  %v1880_v49 = vpop.f32.mrb[87].mxu0 }
 0x1d2   : > { %2264 = vst [vmem:[%s4830_s28 + $0x228] sm:$0xff] %v1431_v48  ;;  %2266 = vst [vmem:[%s4830_s28 + $0x238] sm:$0xff] %v1880_v49 }
 0x1d4   : > { %v1435_v52 = vpop.f32.mrb[88].mxu1  ;;  %v1884_v53 = vpop.f32.mrb[88].mxu0 }
 0x1d5   : > { %2269 = vst [vmem:[%s4830_s28 + $0x250] sm:$0xff] %v1435_v52  ;;  %2271 = vst [vmem:[%s4830_s28 + $0x260] sm:$0xff] %v1884_v53  ;;  %v1437_v54 = vpop.f32.mrb[89].mxu1  ;;  %v1886_v55 = vpop.f32.mrb[89].mxu0 }
 0x1d6   : > { %2270 = vst [vmem:[%s4830_s28 + $0x258] sm:$0xff] %v1437_v54  ;;  %2272 = vst [vmem:[%s4830_s28 + $0x268] sm:$0xff] %v1886_v55 }
 0x1d8   : > { %v1441_v56 = vpop.f32.mrb[90].mxu1  ;;  %v1890_v59 = vpop.f32.mrb[90].mxu0 }
 0x1d9   : > { %2275 = vst [vmem:[%s4830_s28 + $0x280] sm:$0xff] %v1441_v56  ;;  %2277 = vst [vmem:[%s4830_s28 + $0x290] sm:$0xff] %v1890_v59  ;;  %v1443_v60 = vpop.f32.mrb[91].mxu1  ;;  %v1892_v61 = vpop.f32.mrb[91].mxu0 }
 0x1da   : > { %2276 = vst [vmem:[%s4830_s28 + $0x288] sm:$0xff] %v1443_v60  ;;  %2278 = vst [vmem:[%s4830_s28 + $0x298] sm:$0xff] %v1892_v61 }
 0x1dc   : > { %v1447_v63 = vpop.f32.mrb[92].mxu1  ;;  %v1896_v0 = vpop.f32.mrb[92].mxu0 }
 0x1dd   : > { %2281 = vst [vmem:[%s4830_s28 + $0x2b0] sm:$0xff] %v1447_v63  ;;  %2283 = vst [vmem:[%s4830_s28 + $0x2c0] sm:$0xff] %v1896_v0  ;;  %v1449_v4 = vpop.f32.mrb[93].mxu1  ;;  %v1898_v1 = vpop.f32.mrb[93].mxu0 }
 0x1de   : > { %2282 = vst [vmem:[%s4830_s28 + $0x2b8] sm:$0xff] %v1449_v4  ;;  %2284 = vst [vmem:[%s4830_s28 + $0x2c8] sm:$0xff] %v1898_v1 }
 0x1e0   : > { %v1453_v2 = vpop.f32.mrb[94].mxu1  ;;  %v1902_v6 = vpop.f32.mrb[94].mxu0 }
 0x1e1   : > { %2287 = vst [vmem:[%s4830_s28 + $0x2e0] sm:$0xff] %v1453_v2  ;;  %2289 = vst [vmem:[%s4830_s28 + $0x2f0] sm:$0xff] %v1902_v6  ;;  %v1455_v7 = vpop.f32.mrb[95].mxu1  ;;  %v1904_v9 = vpop.f32.mrb[95].mxu0 }
 0x1e2   : > { %2288 = vst [vmem:[%s4830_s28 + $0x2e8] sm:$0xff] %v1455_v7  ;;  %2290 = vst [vmem:[%s4830_s28 + $0x2f8] sm:$0xff] %v1904_v9 }
 0x1e4   : > { %v1459_v10 = vpop.f32.mrb[96].mxu1  ;;  %v1908_v11 = vpop.f32.mrb[96].mxu0 }
 0x1e5   : > { %2293 = vst [vmem:[%s4830_s28 + $0x310] sm:$0xff] %v1459_v10  ;;  %2295 = vst [vmem:[%s4830_s28 + $0x320] sm:$0xff] %v1908_v11  ;;  %v1461_v13 = vpop.f32.mrb[97].mxu1  ;;  %v1910_v14 = vpop.f32.mrb[97].mxu0 }
 0x1e6   : > { %2294 = vst [vmem:[%s4830_s28 + $0x318] sm:$0xff] %v1461_v13  ;;  %2296 = vst [vmem:[%s4830_s28 + $0x328] sm:$0xff] %v1910_v14 }
 0x1e8   : > { %v1465_v15 = vpop.f32.mrb[98].mxu1  ;;  %v1914_v17 = vpop.f32.mrb[98].mxu0 }
 0x1e9   : > { %2299 = vst [vmem:[%s4830_s28 + $0x340] sm:$0xff] %v1465_v15  ;;  %2301 = vst [vmem:[%s4830_s28 + $0x350] sm:$0xff] %v1914_v17  ;;  %v1467_v18 = vpop.f32.mrb[99].mxu1  ;;  %v1916_v20 = vpop.f32.mrb[99].mxu0 }
 0x1ea   : > { %2300 = vst [vmem:[%s4830_s28 + $0x348] sm:$0xff] %v1467_v18  ;;  %2302 = vst [vmem:[%s4830_s28 + $0x358] sm:$0xff] %v1916_v20 }
 0x1ec   : > { %v1471_v21 = vpop.f32.mrb[100].mxu1  ;;  %v1920_v26 = vpop.f32.mrb[100].mxu0 }
 0x1ed   : > { %2305 = vst [vmem:[%s4830_s28 + $0x370] sm:$0xff] %v1471_v21  ;;  %2307 = vst [vmem:[%s4830_s28 + $0x380] sm:$0xff] %v1920_v26  ;;  %v1473_v22 = vpop.f32.mrb[101].mxu1  ;;  %v1922_v23 = vpop.f32.mrb[101].mxu0 }
 0x1ee   : > { %2306 = vst [vmem:[%s4830_s28 + $0x378] sm:$0xff] %v1473_v22  ;;  %2308 = vst [vmem:[%s4830_s28 + $0x388] sm:$0xff] %v1922_v23 }
 0x1f0   : > { %v1477_v27 = vpop.f32.mrb[102].mxu1  ;;  %v1926_v28 = vpop.f32.mrb[102].mxu0 }
 0x1f1   : > { %2311 = vst [vmem:[%s4830_s28 + $0x3a0] sm:$0xff] %v1477_v27  ;;  %2313 = vst [vmem:[%s4830_s28 + $0x3b0] sm:$0xff] %v1926_v28  ;;  %v1479_v29 = vpop.f32.mrb[103].mxu1  ;;  %v1928_v30 = vpop.f32.mrb[103].mxu0 }
 0x1f2   : > { %2312 = vst [vmem:[%s4830_s28 + $0x3a8] sm:$0xff] %v1479_v29  ;;  %2314 = vst [vmem:[%s4830_s28 + $0x3b8] sm:$0xff] %v1928_v30 }
 0x1f4   : > { %v1483_v32 = vpop.f32.mrb[104].mxu1  ;;  %v1932_v33 = vpop.f32.mrb[104].mxu0 }
 0x1f5   : > { %2317 = vst [vmem:[%s4830_s28 + $0x3d0] sm:$0xff] %v1483_v32  ;;  %2319 = vst [vmem:[%s4830_s28 + $0x3e0] sm:$0xff] %v1932_v33  ;;  %v1485_v44 = vpop.f32.mrb[105].mxu1  ;;  %v1934_v34 = vpop.f32.mrb[105].mxu0 }
 0x1f6   : > { %2318 = vst [vmem:[%s4830_s28 + $0x3d8] sm:$0xff] %v1485_v44  ;;  %2320 = vst [vmem:[%s4830_s28 + $0x3e8] sm:$0xff] %v1934_v34 }
 0x1f8   : > { %v1489_v36 = vpop.f32.mrb[106].mxu1  ;;  %v1938_v37 = vpop.f32.mrb[106].mxu0 }
 0x1f9   : > { %2323 = vst [vmem:[%s4830_s28 + $0x400] sm:$0xff] %v1489_v36  ;;  %2325 = vst [vmem:[%s4830_s28 + $0x410] sm:$0xff] %v1938_v37  ;;  %v1491_v38 = vpop.f32.mrb[107].mxu1  ;;  %v1940_v50 = vpop.f32.mrb[107].mxu0 }
 0x1fa   : > { %2324 = vst [vmem:[%s4830_s28 + $0x408] sm:$0xff] %v1491_v38  ;;  %2326 = vst [vmem:[%s4830_s28 + $0x418] sm:$0xff] %v1940_v50 }
 0x1fc   : > { %v1495_v39 = vpop.f32.mrb[108].mxu1  ;;  %v1944_v16 = vpop.f32.mrb[108].mxu0 }
 0x1fd   : > { %2329 = vst [vmem:[%s4830_s28 + $0x430] sm:$0xff] %v1495_v39  ;;  %2331 = vst [vmem:[%s4830_s28 + $0x440] sm:$0xff] %v1944_v16  ;;  %v1497_v3 = vpop.f32.mrb[109].mxu1  ;;  %v1946_v8 = vpop.f32.mrb[109].mxu0 }
 0x1fe   : > { %2330 = vst [vmem:[%s4830_s28 + $0x438] sm:$0xff] %v1497_v3  ;;  %2332 = vst [vmem:[%s4830_s28 + $0x448] sm:$0xff] %v1946_v8 }
 0x200   : > { %v1501_v58 = vpop.f32.mrb[110].mxu1  ;;  %v1950_v19 = vpop.f32.mrb[110].mxu0 }
 0x201   : > { %2335 = vst [vmem:[%s4830_s28 + $0x460] sm:$0xff] %v1501_v58  ;;  %2337 = vst [vmem:[%s4830_s28 + $0x470] sm:$0xff] %v1950_v19  ;;  %v1503_v25 = vpop.f32.mrb[111].mxu1  ;;  %v1952_v35 = vpop.f32.mrb[111].mxu0 }
 0x202   : > { %2336 = vst [vmem:[%s4830_s28 + $0x468] sm:$0xff] %v1503_v25  ;;  %2338 = vst [vmem:[%s4830_s28 + $0x478] sm:$0xff] %v1952_v35 }
 0x204   : > { %v1507_v41 = vpop.f32.mrb[112].mxu1  ;;  %v1956_v51 = vpop.f32.mrb[112].mxu0 }
 0x205   : > { %2341 = vst [vmem:[%s4830_s28 + $0x490] sm:$0xff] %v1507_v41  ;;  %2343 = vst [vmem:[%s4830_s28 + $0x4a0] sm:$0xff] %v1956_v51  ;;  %v1509_v62 = vpop.f32.mrb[113].mxu1  ;;  %v1958_v57 = vpop.f32.mrb[113].mxu0 }
 0x206   : > { %2342 = vst [vmem:[%s4830_s28 + $0x498] sm:$0xff] %v1509_v62  ;;  %2344 = vst [vmem:[%s4830_s28 + $0x4a8] sm:$0xff] %v1958_v57 }
 0x208   : > { %v1513_v5 = vpop.f32.mrb[114].mxu1  ;;  %v1962_v12 = vpop.f32.mrb[114].mxu0 }
 0x209   : > { %2347 = vst [vmem:[%s4830_s28 + $0x4c0] sm:$0xff] %v1513_v5  ;;  %2349 = vst [vmem:[%s4830_s28 + $0x4d0] sm:$0xff] %v1962_v12  ;;  %v1515_v24 = vpop.f32.mrb[115].mxu1  ;;  %v1964_v31 = vpop.f32.mrb[115].mxu0 }
 0x20a   : > { %2348 = vst [vmem:[%s4830_s28 + $0x4c8] sm:$0xff] %v1515_v24  ;;  %2350 = vst [vmem:[%s4830_s28 + $0x4d8] sm:$0xff] %v1964_v31 }
 0x20c   : > { %v1519_v40 = vpop.f32.mrb[116].mxu1  ;;  %v1968_v42 = vpop.f32.mrb[116].mxu0 }
 0x20d   : > { %2353 = vst [vmem:[%s4830_s28 + $0x4f0] sm:$0xff] %v1519_v40  ;;  %2355 = vst [vmem:[%s4830_s28 + $0x500] sm:$0xff] %v1968_v42  ;;  %v1521_v43 = vpop.f32.mrb[117].mxu1  ;;  %v1970_v45 = vpop.f32.mrb[117].mxu0 }
 0x20e   : > { %2354 = vst [vmem:[%s4830_s28 + $0x4f8] sm:$0xff] %v1521_v43  ;;  %2356 = vst [vmem:[%s4830_s28 + $0x508] sm:$0xff] %v1970_v45 }
 0x210   : > { %v1525_v46 = vpop.f32.mrb[118].mxu1  ;;  %v1974_v47 = vpop.f32.mrb[118].mxu0 }
 0x211   : > { %2359 = vst [vmem:[%s4830_s28 + $0x520] sm:$0xff] %v1525_v46  ;;  %2361 = vst [vmem:[%s4830_s28 + $0x530] sm:$0xff] %v1974_v47  ;;  %v1527_v48 = vpop.f32.mrb[119].mxu1  ;;  %v1976_v49 = vpop.f32.mrb[119].mxu0 }
 0x212   : > { %2360 = vst [vmem:[%s4830_s28 + $0x528] sm:$0xff] %v1527_v48  ;;  %2362 = vst [vmem:[%s4830_s28 + $0x538] sm:$0xff] %v1976_v49 }
 0x214   : > { %v1531_v52 = vpop.f32.mrb[120].mxu1  ;;  %v1980_v53 = vpop.f32.mrb[120].mxu0 }
 0x215   : > { %2365 = vst [vmem:[%s4830_s28 + $0x550] sm:$0xff] %v1531_v52  ;;  %2367 = vst [vmem:[%s4830_s28 + $0x560] sm:$0xff] %v1980_v53  ;;  %v1533_v54 = vpop.f32.mrb[121].mxu1  ;;  %v1982_v55 = vpop.f32.mrb[121].mxu0 }
 0x216   : > { %2366 = vst [vmem:[%s4830_s28 + $0x558] sm:$0xff] %v1533_v54  ;;  %2368 = vst [vmem:[%s4830_s28 + $0x568] sm:$0xff] %v1982_v55 }
 0x218   : > { %v1537_v56 = vpop.f32.mrb[122].mxu1  ;;  %v1986_v59 = vpop.f32.mrb[122].mxu0 }
 0x219   : > { %2371 = vst [vmem:[%s4830_s28 + $0x580] sm:$0xff] %v1537_v56  ;;  %2373 = vst [vmem:[%s4830_s28 + $0x590] sm:$0xff] %v1986_v59  ;;  %v1539_v60 = vpop.f32.mrb[123].mxu1  ;;  %v1988_v61 = vpop.f32.mrb[123].mxu0 }
 0x21a   : > { %2372 = vst [vmem:[%s4830_s28 + $0x588] sm:$0xff] %v1539_v60  ;;  %2374 = vst [vmem:[%s4830_s28 + $0x598] sm:$0xff] %v1988_v61 }
 0x21c   : > { %v1543_v63 = vpop.f32.mrb[124].mxu1  ;;  %v1992_v0 = vpop.f32.mrb[124].mxu0 }
 0x21d   : > { %2377 = vst [vmem:[%s4830_s28 + $0x5b0] sm:$0xff] %v1543_v63  ;;  %2379 = vst [vmem:[%s4830_s28 + $0x5c0] sm:$0xff] %v1992_v0  ;;  %v1545_v4 = vpop.f32.mrb[125].mxu1  ;;  %v1994_v1 = vpop.f32.mrb[125].mxu0 }
 0x21e   : > { %2378 = vst [vmem:[%s4830_s28 + $0x5b8] sm:$0xff] %v1545_v4  ;;  %2380 = vst [vmem:[%s4830_s28 + $0x5c8] sm:$0xff] %v1994_v1 }
 0x220   : > { %v1549_v2 = vpop.f32.mrb[126].mxu1  ;;  %v1998_v6 = vpop.f32.mrb[126].mxu0 }
 0x221   : > { %2383 = vst [vmem:[%s4830_s28 + $0x5e0] sm:$0xff] %v1549_v2  ;;  %2385 = vst [vmem:[%s4830_s28 + $0x5f0] sm:$0xff] %v1998_v6  ;;  %v1551_v7 = vpop.f32.mrb[127].mxu1  ;;  %v2000_v9 = vpop.f32.mrb[127].mxu0 }
 0x222   : > { %2384 = vst [vmem:[%s4830_s28 + $0x5e8] sm:$0xff] %v1551_v7  ;;  %2386 = vst [vmem:[%s4830_s28 + $0x5f8] sm:$0xff] %v2000_v9 }
 0x224   : > { %v1555_v10 = vpop.f32.mrb[128].mxu1  ;;  %v2004_v11 = vpop.f32.mrb[128].mxu0 }
 0x225   : > { %2389 = vst [vmem:[%s4830_s28 + $0x610] sm:$0xff] %v1555_v10  ;;  %2391 = vst [vmem:[%s4830_s28 + $0x620] sm:$0xff] %v2004_v11  ;;  %v1557_v13 = vpop.f32.mrb[129].mxu1  ;;  %v2006_v14 = vpop.f32.mrb[129].mxu0 }
 0x226   : > { %2390 = vst [vmem:[%s4830_s28 + $0x618] sm:$0xff] %v1557_v13  ;;  %2392 = vst [vmem:[%s4830_s28 + $0x628] sm:$0xff] %v2006_v14 }
 0x228   : > { %v1561_v15 = vpop.f32.mrb[130].mxu1  ;;  %v2010_v17 = vpop.f32.mrb[130].mxu0 }
 0x229   : > { %2395 = vst [vmem:[%s4830_s28 + $0x640] sm:$0xff] %v1561_v15  ;;  %2397 = vst [vmem:[%s4830_s28 + $0x650] sm:$0xff] %v2010_v17  ;;  %v1563_v18 = vpop.f32.mrb[131].mxu1  ;;  %v2012_v20 = vpop.f32.mrb[131].mxu0 }
 0x22a   : > { %2396 = vst [vmem:[%s4830_s28 + $0x648] sm:$0xff] %v1563_v18  ;;  %2398 = vst [vmem:[%s4830_s28 + $0x658] sm:$0xff] %v2012_v20 }
 0x22c   : > { %v1567_v21 = vpop.f32.mrb[132].mxu1  ;;  %v2016_v26 = vpop.f32.mrb[132].mxu0 }
 0x22d   : > { %2401 = vst [vmem:[%s4830_s28 + $0x670] sm:$0xff] %v1567_v21  ;;  %2403 = vst [vmem:[%s4830_s28 + $0x680] sm:$0xff] %v2016_v26  ;;  %v1569_v22 = vpop.f32.mrb[133].mxu1  ;;  %v2018_v23 = vpop.f32.mrb[133].mxu0 }
 0x22e   : > { %2402 = vst [vmem:[%s4830_s28 + $0x678] sm:$0xff] %v1569_v22  ;;  %2404 = vst [vmem:[%s4830_s28 + $0x688] sm:$0xff] %v2018_v23 }
 0x230   : > { %v1573_v27 = vpop.f32.mrb[134].mxu1  ;;  %v2022_v28 = vpop.f32.mrb[134].mxu0 }
 0x231   : > { %2407 = vst [vmem:[%s4830_s28 + $0x6a0] sm:$0xff] %v1573_v27  ;;  %2409 = vst [vmem:[%s4830_s28 + $0x6b0] sm:$0xff] %v2022_v28  ;;  %v1575_v29 = vpop.f32.mrb[135].mxu1  ;;  %v2024_v30 = vpop.f32.mrb[135].mxu0 }
 0x232   : > { %2408 = vst [vmem:[%s4830_s28 + $0x6a8] sm:$0xff] %v1575_v29  ;;  %2410 = vst [vmem:[%s4830_s28 + $0x6b8] sm:$0xff] %v2024_v30 }
 0x234   : > { %v1579_v32 = vpop.f32.mrb[136].mxu1  ;;  %v2028_v33 = vpop.f32.mrb[136].mxu0 }
 0x235   : > { %2413 = vst [vmem:[%s4830_s28 + $0x6d0] sm:$0xff] %v1579_v32  ;;  %2415 = vst [vmem:[%s4830_s28 + $0x6e0] sm:$0xff] %v2028_v33  ;;  %v1581_v44 = vpop.f32.mrb[137].mxu1  ;;  %v2030_v34 = vpop.f32.mrb[137].mxu0 }
 0x236   : > { %2414 = vst [vmem:[%s4830_s28 + $0x6d8] sm:$0xff] %v1581_v44  ;;  %2416 = vst [vmem:[%s4830_s28 + $0x6e8] sm:$0xff] %v2030_v34 }
 0x238   : > { %v1585_v36 = vpop.f32.mrb[138].mxu1  ;;  %v2034_v37 = vpop.f32.mrb[138].mxu0 }
 0x239   : > { %2419 = vst [vmem:[%s4830_s28 + $0x700] sm:$0xff] %v1585_v36  ;;  %2421 = vst [vmem:[%s4830_s28 + $0x710] sm:$0xff] %v2034_v37  ;;  %v1587_v38 = vpop.f32.mrb[139].mxu1  ;;  %v2036_v50 = vpop.f32.mrb[139].mxu0 }
 0x23a   : > { %2420 = vst [vmem:[%s4830_s28 + $0x708] sm:$0xff] %v1587_v38  ;;  %2422 = vst [vmem:[%s4830_s28 + $0x718] sm:$0xff] %v2036_v50 }
 0x23c   : > { %v1591_v39 = vpop.f32.mrb[140].mxu1  ;;  %v2040_v16 = vpop.f32.mrb[140].mxu0 }
 0x23d   : > { %2425 = vst [vmem:[%s4830_s28 + $0x730] sm:$0xff] %v1591_v39  ;;  %2427 = vst [vmem:[%s4830_s28 + $0x740] sm:$0xff] %v2040_v16  ;;  %v1593_v3 = vpop.f32.mrb[141].mxu1  ;;  %v2042_v8 = vpop.f32.mrb[141].mxu0 }
 0x23e   : > { %2426 = vst [vmem:[%s4830_s28 + $0x738] sm:$0xff] %v1593_v3  ;;  %2428 = vst [vmem:[%s4830_s28 + $0x748] sm:$0xff] %v2042_v8 }
 0x240   : > { %v1597_v58 = vpop.f32.mrb[142].mxu1  ;;  %v2046_v19 = vpop.f32.mrb[142].mxu0 }
 0x241   : > { %2431 = vst [vmem:[%s4830_s28 + $0x760] sm:$0xff] %v1597_v58  ;;  %2433 = vst [vmem:[%s4830_s28 + $0x770] sm:$0xff] %v2046_v19  ;;  %v1599_v25 = vpop.f32.mrb[143].mxu1  ;;  %v2048_v35 = vpop.f32.mrb[143].mxu0 }
 0x242   : > { %2432 = vst [vmem:[%s4830_s28 + $0x768] sm:$0xff] %v1599_v25  ;;  %2434 = vst [vmem:[%s4830_s28 + $0x778] sm:$0xff] %v2048_v35 }
 0x244   : > { %v1603_v41 = vpop.f32.mrb[144].mxu1  ;;  %v2052_v51 = vpop.f32.mrb[144].mxu0 }
 0x245   : > { %2437 = vst [vmem:[%s4830_s28 + $0x790] sm:$0xff] %v1603_v41  ;;  %2439 = vst [vmem:[%s4830_s28 + $0x7a0] sm:$0xff] %v2052_v51  ;;  %v1605_v62 = vpop.f32.mrb[145].mxu1  ;;  %v2054_v57 = vpop.f32.mrb[145].mxu0 }
 0x246   : > { %2438 = vst [vmem:[%s4830_s28 + $0x798] sm:$0xff] %v1605_v62  ;;  %2440 = vst [vmem:[%s4830_s28 + $0x7a8] sm:$0xff] %v2054_v57 }
 0x248   : > { %v1609_v5 = vpop.f32.mrb[146].mxu1  ;;  %v2058_v12 = vpop.f32.mrb[146].mxu0 }
 0x249   : > { %2443 = vst [vmem:[%s4830_s28 + $0x7c0] sm:$0xff] %v1609_v5  ;;  %2445 = vst [vmem:[%s4830_s28 + $0x7d0] sm:$0xff] %v2058_v12  ;;  %v1611_v24 = vpop.f32.mrb[147].mxu1  ;;  %v2060_v31 = vpop.f32.mrb[147].mxu0 }
 0x24a   : > { %2444 = vst [vmem:[%s4830_s28 + $0x7c8] sm:$0xff] %v1611_v24  ;;  %2446 = vst [vmem:[%s4830_s28 + $0x7d8] sm:$0xff] %v2060_v31 }
 0x24c   : > { %v1615_v40 = vpop.f32.mrb[148].mxu1  ;;  %v2064_v42 = vpop.f32.mrb[148].mxu0 }
 0x24d   : > { %2449 = vst [vmem:[%s4830_s28 + $0x7f0] sm:$0xff] %v1615_v40  ;;  %2451 = vst [vmem:[%s4830_s28 + $0x800] sm:$0xff] %v2064_v42  ;;  %v1617_v43 = vpop.f32.mrb[149].mxu1  ;;  %v2066_v45 = vpop.f32.mrb[149].mxu0 }
 0x24e   : > { %2450 = vst [vmem:[%s4830_s28 + $0x7f8] sm:$0xff] %v1617_v43  ;;  %2452 = vst [vmem:[%s4830_s28 + $0x808] sm:$0xff] %v2066_v45 }
 0x250   : > { %v1621_v46 = vpop.f32.mrb[150].mxu1  ;;  %v2070_v47 = vpop.f32.mrb[150].mxu0 }
 0x251   : > { %2455 = vst [vmem:[%s4830_s28 + $0x820] sm:$0xff] %v1621_v46  ;;  %2457 = vst [vmem:[%s4830_s28 + $0x830] sm:$0xff] %v2070_v47  ;;  %v1623_v48 = vpop.f32.mrb[151].mxu1  ;;  %v2072_v49 = vpop.f32.mrb[151].mxu0 }
 0x252   : > { %2456 = vst [vmem:[%s4830_s28 + $0x828] sm:$0xff] %v1623_v48  ;;  %2458 = vst [vmem:[%s4830_s28 + $0x838] sm:$0xff] %v2072_v49 }
 0x254   : > { %v1627_v52 = vpop.f32.mrb[152].mxu1  ;;  %v2076_v53 = vpop.f32.mrb[152].mxu0 }
 0x255   : > { %2461 = vst [vmem:[%s4830_s28 + $0x850] sm:$0xff] %v1627_v52  ;;  %2463 = vst [vmem:[%s4830_s28 + $0x860] sm:$0xff] %v2076_v53  ;;  %v1629_v54 = vpop.f32.mrb[153].mxu1  ;;  %v2078_v55 = vpop.f32.mrb[153].mxu0 }
 0x256   : > { %2462 = vst [vmem:[%s4830_s28 + $0x858] sm:$0xff] %v1629_v54  ;;  %2464 = vst [vmem:[%s4830_s28 + $0x868] sm:$0xff] %v2078_v55 }
 0x258   : > { %v1633_v56 = vpop.f32.mrb[154].mxu1  ;;  %v2082_v59 = vpop.f32.mrb[154].mxu0 }
 0x259   : > { %2467 = vst [vmem:[%s4830_s28 + $0x880] sm:$0xff] %v1633_v56  ;;  %2469 = vst [vmem:[%s4830_s28 + $0x890] sm:$0xff] %v2082_v59  ;;  %v1635_v60 = vpop.f32.mrb[155].mxu1  ;;  %v2084_v61 = vpop.f32.mrb[155].mxu0 }
 0x25a   : > { %2468 = vst [vmem:[%s4830_s28 + $0x888] sm:$0xff] %v1635_v60  ;;  %2470 = vst [vmem:[%s4830_s28 + $0x898] sm:$0xff] %v2084_v61 }
 0x25c   : > { %v1639_v63 = vpop.f32.mrb[156].mxu1  ;;  %v2088_v0 = vpop.f32.mrb[156].mxu0 }
 0x25d   : > { %2473 = vst [vmem:[%s4830_s28 + $0x8b0] sm:$0xff] %v1639_v63  ;;  %2475 = vst [vmem:[%s4830_s28 + $0x8c0] sm:$0xff] %v2088_v0  ;;  %v1641_v4 = vpop.f32.mrb[157].mxu1  ;;  %v2090_v1 = vpop.f32.mrb[157].mxu0 }
 0x25e   : > { %2474 = vst [vmem:[%s4830_s28 + $0x8b8] sm:$0xff] %v1641_v4  ;;  %2476 = vst [vmem:[%s4830_s28 + $0x8c8] sm:$0xff] %v2090_v1 }
 0x260   : > { %v1645_v2 = vpop.f32.mrb[158].mxu1  ;;  %v2094_v6 = vpop.f32.mrb[158].mxu0 }
 0x261   : > { %2479 = vst [vmem:[%s4830_s28 + $0x8e0] sm:$0xff] %v1645_v2  ;;  %2481 = vst [vmem:[%s4830_s28 + $0x8f0] sm:$0xff] %v2094_v6  ;;  %v1647_v7 = vpop.f32.mrb[159].mxu1  ;;  %v2096_v9 = vpop.f32.mrb[159].mxu0 }
 0x262   : > { %2480 = vst [vmem:[%s4830_s28 + $0x8e8] sm:$0xff] %v1647_v7  ;;  %2482 = vst [vmem:[%s4830_s28 + $0x8f8] sm:$0xff] %v2096_v9 }
 0x264   : > { %v1651_v10 = vpop.f32.mrb[160].mxu1  ;;  %v2100_v11 = vpop.f32.mrb[160].mxu0 }
 0x265   : > { %2485 = vst [vmem:[%s4830_s28 + $0x910] sm:$0xff] %v1651_v10  ;;  %2487 = vst [vmem:[%s4830_s28 + $0x920] sm:$0xff] %v2100_v11  ;;  %v1653_v13 = vpop.f32.mrb[161].mxu1  ;;  %v2102_v14 = vpop.f32.mrb[161].mxu0 }
 0x266   : > { %2486 = vst [vmem:[%s4830_s28 + $0x918] sm:$0xff] %v1653_v13  ;;  %2488 = vst [vmem:[%s4830_s28 + $0x928] sm:$0xff] %v2102_v14 }
 0x268   : > { %v1657_v15 = vpop.f32.mrb[162].mxu1  ;;  %v2106_v17 = vpop.f32.mrb[162].mxu0 }
 0x269   : > { %2491 = vst [vmem:[%s4830_s28 + $0x940] sm:$0xff] %v1657_v15  ;;  %2493 = vst [vmem:[%s4830_s28 + $0x950] sm:$0xff] %v2106_v17  ;;  %v1659_v18 = vpop.f32.mrb[163].mxu1  ;;  %v2108_v20 = vpop.f32.mrb[163].mxu0 }
 0x26a   : > { %2492 = vst [vmem:[%s4830_s28 + $0x948] sm:$0xff] %v1659_v18  ;;  %2494 = vst [vmem:[%s4830_s28 + $0x958] sm:$0xff] %v2108_v20 }
 0x26c   : > { %v1663_v21 = vpop.f32.mrb[164].mxu1  ;;  %v2112_v26 = vpop.f32.mrb[164].mxu0 }
 0x26d   : > { %2497 = vst [vmem:[%s4830_s28 + $0x970] sm:$0xff] %v1663_v21  ;;  %2499 = vst [vmem:[%s4830_s28 + $0x980] sm:$0xff] %v2112_v26  ;;  %v1665_v22 = vpop.f32.mrb[165].mxu1  ;;  %v2114_v23 = vpop.f32.mrb[165].mxu0 }
 0x26e   : > { %2498 = vst [vmem:[%s4830_s28 + $0x978] sm:$0xff] %v1665_v22  ;;  %2500 = vst [vmem:[%s4830_s28 + $0x988] sm:$0xff] %v2114_v23 }
 0x270   : > { %v1669_v27 = vpop.f32.mrb[166].mxu1  ;;  %v2118_v28 = vpop.f32.mrb[166].mxu0 }
 0x271   : > { %2503 = vst [vmem:[%s4830_s28 + $0x9a0] sm:$0xff] %v1669_v27  ;;  %2505 = vst [vmem:[%s4830_s28 + $0x9b0] sm:$0xff] %v2118_v28  ;;  %v1671_v29 = vpop.f32.mrb[167].mxu1  ;;  %v2120_v30 = vpop.f32.mrb[167].mxu0 }
 0x272   : > { %2504 = vst [vmem:[%s4830_s28 + $0x9a8] sm:$0xff] %v1671_v29  ;;  %2506 = vst [vmem:[%s4830_s28 + $0x9b8] sm:$0xff] %v2120_v30 }
 0x274   : > { %v1675_v32 = vpop.f32.mrb[168].mxu1  ;;  %v2124_v33 = vpop.f32.mrb[168].mxu0 }
 0x275   : > { %2509 = vst [vmem:[%s4830_s28 + $0x9d0] sm:$0xff] %v1675_v32  ;;  %2511 = vst [vmem:[%s4830_s28 + $0x9e0] sm:$0xff] %v2124_v33  ;;  %v1677_v44 = vpop.f32.mrb[169].mxu1  ;;  %v2126_v34 = vpop.f32.mrb[169].mxu0 }
 0x276   : > { %2510 = vst [vmem:[%s4830_s28 + $0x9d8] sm:$0xff] %v1677_v44  ;;  %2512 = vst [vmem:[%s4830_s28 + $0x9e8] sm:$0xff] %v2126_v34 }
 0x278   : > { %v1681_v36 = vpop.f32.mrb[170].mxu1  ;;  %v2130_v37 = vpop.f32.mrb[170].mxu0 }
 0x279   : > { %2515 = vst [vmem:[%s4830_s28 + $0xa00] sm:$0xff] %v1681_v36  ;;  %2517 = vst [vmem:[%s4830_s28 + $0xa10] sm:$0xff] %v2130_v37  ;;  %v1683_v38 = vpop.f32.mrb[171].mxu1  ;;  %v2132_v50 = vpop.f32.mrb[171].mxu0 }
 0x27a   : > { %2516 = vst [vmem:[%s4830_s28 + $0xa08] sm:$0xff] %v1683_v38  ;;  %2518 = vst [vmem:[%s4830_s28 + $0xa18] sm:$0xff] %v2132_v50 }
 0x27c   : > { %v1687_v39 = vpop.f32.mrb[172].mxu1  ;;  %v2136_v16 = vpop.f32.mrb[172].mxu0 }
 0x27d   : > { %2521 = vst [vmem:[%s4830_s28 + $0xa30] sm:$0xff] %v1687_v39  ;;  %2523 = vst [vmem:[%s4830_s28 + $0xa40] sm:$0xff] %v2136_v16  ;;  %v1689_v3 = vpop.f32.mrb[173].mxu1  ;;  %v2138_v8 = vpop.f32.mrb[173].mxu0 }
 0x27e   : > { %2522 = vst [vmem:[%s4830_s28 + $0xa38] sm:$0xff] %v1689_v3  ;;  %2524 = vst [vmem:[%s4830_s28 + $0xa48] sm:$0xff] %v2138_v8 }
 0x280   : > { %v1693_v58 = vpop.f32.mrb[174].mxu1  ;;  %v2142_v19 = vpop.f32.mrb[174].mxu0 }
 0x281   : > { %2527 = vst [vmem:[%s4830_s28 + $0xa60] sm:$0xff] %v1693_v58  ;;  %2529 = vst [vmem:[%s4830_s28 + $0xa70] sm:$0xff] %v2142_v19  ;;  %v1695_v25 = vpop.f32.mrb[175].mxu1  ;;  %v2144_v35 = vpop.f32.mrb[175].mxu0 }
 0x282   : > { %2528 = vst [vmem:[%s4830_s28 + $0xa68] sm:$0xff] %v1695_v25  ;;  %2530 = vst [vmem:[%s4830_s28 + $0xa78] sm:$0xff] %v2144_v35 }
 0x284   : > { %v1699_v41 = vpop.f32.mrb[176].mxu1  ;;  %v2148_v51 = vpop.f32.mrb[176].mxu0 }
 0x285   : > { %2533 = vst [vmem:[%s4830_s28 + $0xa90] sm:$0xff] %v1699_v41  ;;  %2535 = vst [vmem:[%s4830_s28 + $0xaa0] sm:$0xff] %v2148_v51  ;;  %v1701_v62 = vpop.f32.mrb[177].mxu1  ;;  %v2150_v57 = vpop.f32.mrb[177].mxu0 }
 0x286   : > { %2534 = vst [vmem:[%s4830_s28 + $0xa98] sm:$0xff] %v1701_v62  ;;  %2536 = vst [vmem:[%s4830_s28 + $0xaa8] sm:$0xff] %v2150_v57 }
 0x288   : > { %v1705_v5 = vpop.f32.mrb[178].mxu1  ;;  %v2154_v12 = vpop.f32.mrb[178].mxu0 }
 0x289   : > { %2539 = vst [vmem:[%s4830_s28 + $0xac0] sm:$0xff] %v1705_v5  ;;  %2541 = vst [vmem:[%s4830_s28 + $0xad0] sm:$0xff] %v2154_v12  ;;  %v1707_v24 = vpop.f32.mrb[179].mxu1  ;;  %v2156_v31 = vpop.f32.mrb[179].mxu0 }
 0x28a   : > { %2540 = vst [vmem:[%s4830_s28 + $0xac8] sm:$0xff] %v1707_v24  ;;  %2542 = vst [vmem:[%s4830_s28 + $0xad8] sm:$0xff] %v2156_v31 }
 0x28c   : > { %v1711_v40 = vpop.f32.mrb[180].mxu1  ;;  %v2160_v42 = vpop.f32.mrb[180].mxu0 }
 0x28d   : > { %2545 = vst [vmem:[%s4830_s28 + $0xaf0] sm:$0xff] %v1711_v40  ;;  %2547 = vst [vmem:[%s4830_s28 + $0xb00] sm:$0xff] %v2160_v42  ;;  %v1713_v43 = vpop.f32.mrb[181].mxu1  ;;  %v2162_v45 = vpop.f32.mrb[181].mxu0 }
 0x28e   : > { %2546 = vst [vmem:[%s4830_s28 + $0xaf8] sm:$0xff] %v1713_v43  ;;  %2548 = vst [vmem:[%s4830_s28 + $0xb08] sm:$0xff] %v2162_v45 }
 0x290   : > { %v1717_v46 = vpop.f32.mrb[182].mxu1  ;;  %v2166_v47 = vpop.f32.mrb[182].mxu0 }
 0x291   : > { %2551 = vst [vmem:[%s4830_s28 + $0xb20] sm:$0xff] %v1717_v46  ;;  %2553 = vst [vmem:[%s4830_s28 + $0xb30] sm:$0xff] %v2166_v47  ;;  %v1719_v48 = vpop.f32.mrb[183].mxu1  ;;  %v2168_v49 = vpop.f32.mrb[183].mxu0 }
 0x292   : > { %2552 = vst [vmem:[%s4830_s28 + $0xb28] sm:$0xff] %v1719_v48  ;;  %2554 = vst [vmem:[%s4830_s28 + $0xb38] sm:$0xff] %v2168_v49 }
 0x294   : > { %v1723_v52 = vpop.f32.mrb[184].mxu1  ;;  %v2172_v53 = vpop.f32.mrb[184].mxu0 }
 0x295   : > { %2557 = vst [vmem:[%s4830_s28 + $0xb50] sm:$0xff] %v1723_v52  ;;  %2559 = vst [vmem:[%s4830_s28 + $0xb60] sm:$0xff] %v2172_v53  ;;  %v1725_v54 = vpop.f32.mrb[185].mxu1  ;;  %v2174_v55 = vpop.f32.mrb[185].mxu0 }
 0x296   : > { %2558 = vst [vmem:[%s4830_s28 + $0xb58] sm:$0xff] %v1725_v54  ;;  %2560 = vst [vmem:[%s4830_s28 + $0xb68] sm:$0xff] %v2174_v55 }
 0x298   : > { %v1729_v56 = vpop.f32.mrb[186].mxu1  ;;  %v2178_v59 = vpop.f32.mrb[186].mxu0 }
 0x299   : > { %2563 = vst [vmem:[%s4830_s28 + $0xb80] sm:$0xff] %v1729_v56  ;;  %2565 = vst [vmem:[%s4830_s28 + $0xb90] sm:$0xff] %v2178_v59  ;;  %v1731_v60 = vpop.f32.mrb[187].mxu1  ;;  %v2180_v61 = vpop.f32.mrb[187].mxu0 }
 0x29a   : > { %2564 = vst [vmem:[%s4830_s28 + $0xb88] sm:$0xff] %v1731_v60  ;;  %2566 = vst [vmem:[%s4830_s28 + $0xb98] sm:$0xff] %v2180_v61 }
 0x29c   : > { %v1735_v63 = vpop.f32.mrb[188].mxu1  ;;  %v2184_v0 = vpop.f32.mrb[188].mxu0  ;;  %2586 = sbr.rel (!%p3864_p4) target bundleno = 704 (0x2c0), region = 32 }
 0x29d   : > { %2569 = vst [vmem:[%s4830_s28 + $0xbb0] sm:$0xff] %v1735_v63  ;;  %2571 = vst [vmem:[%s4830_s28 + $0xbc0] sm:$0xff] %v2184_v0  ;;  %v1737_v4 = vpop.f32.mrb[189].mxu1  ;;  %v2186_v1 = vpop.f32.mrb[189].mxu0 }
 0x29e   : > { %2570 = vst [vmem:[%s4830_s28 + $0xbb8] sm:$0xff] %v1737_v4  ;;  %2572 = vst [vmem:[%s4830_s28 + $0xbc8] sm:$0xff] %v2186_v1 }
 0x2a0   : > { %v1741_v2 = vpop.f32.mrb[190].mxu1  ;;  %v2190_v6 = vpop.f32.mrb[190].mxu0 }
 0x2a1   : > { %2575 = vst [vmem:[%s4830_s28 + $0xbe0] sm:$0xff] %v1741_v2  ;;  %2577 = vst [vmem:[%s4830_s28 + $0xbf0] sm:$0xff] %v2190_v6  ;;  %v1743_v7 = vpop.f32.mrb[191].mxu1  ;;  %v2192_v9 = vpop.f32.mrb[191].mxu0 }
 0x2a2   : > { %2576 = vst [vmem:[%s4830_s28 + $0xbe8] sm:$0xff] %v1743_v7  ;;  %2578 = vst [vmem:[%s4830_s28 + $0xbf8] sm:$0xff] %v2192_v9 }
 0x2a3   : > { %s5553_s30 = smov (!%p2590_p12, %s2589_s30), 64 }
 0x2a4   : > { %s5477_s4 = smul.u32 768, %s5553_s30 }
 0x2a6   : > { %s2595_s5 = ssub.s32 49152, %s5477_s4 }
 0x2a7   : > { %2596 = vsyncadd %s5472_s3, %s2595_s5  ;;  %p2990_p13 = scmp.ne.s32.totalorder %s5477_s4, 0  ;;  %s3637_s6 = smul.u32 49152, %s3796_s12 }
 0x2a8   : > { %s2603_s7 = sshll.u32 %s4830_s28, 4  ;;  %s3806_s16 = smov [#allocation2]   ;;  %s5489_s7 = int_to_ptr.vmem [resolvable:$true] %s2603_s7 }
 0x2a9   : > { %s5487_s15 = scalar_lea.hbm %s5540_s2, %s3637_s6  ;;  %s3726_s29 = scalar_lea.vmem %s5489_s7, %s5477_s4 }
 0x2aa   : > { %p3727_p0 = scmp.ne.s32.totalorder %s5489_s7, %s3726_s29  ;;  %s3730_s18 = sshll.u32 %s3806_s16, 4  ;;  %s3731_s18 = int_to_ptr.vmem [resolvable:$false] %s3730_s18 }
 0x2ab   : > { %s3732_s12 = scalar_lea.vmem %s3731_s18, 98304  ;;  %p3733_p3 = scmp.lt.s32.totalorder %s5489_s7, %s3731_s18 }
 0x2ac   : > { %p3728_p1 = pnand %p3727_p0, %p2990_p13  ;;  %p3734_p4 = scmp.lt.s32.totalorder %s3732_s12, %s3726_s29 }
 0x2ae   : > { %p3729_p2 = pneg %p3728_p1  ;;  %p3735_p5 = por %p3734_p4, %p3733_p3 }
 0x2b0   : > { %p3736_p6 = pnand %p3735_p5, %p3729_p2 }
 0x2b2   : > { %3739 = shalt.err (!%p3736_p6)
}
 0x2b3   : > { %s3740_s20 = scalar_lea.hbm %s5487_s15, %s5477_s4  ;;  %s3744_s25 = scalar_lea.hbm %s5540_s2, 73728 }
 0x2b4   : > { %p3741_p7 = scmp.ne.s32.totalorder %s5487_s15, %s3740_s20  ;;  %p3745_p11 = scmp.lt.u32.totalorder %s5487_s15, %s5540_s2 }
 0x2b5   : > { %p3746_p12 = scmp.lt.u32.totalorder %s3744_s25, %s3740_s20  ;;  %p3748_p1 = scmp.lt.u32.totalorder %s3740_s20, %s5487_s15 }
 0x2b6   : > { %p3742_p9 = pnand %p3741_p7, %p2990_p13 }
 0x2b7   : > { %p3747_p0 = por %p3746_p12, %p3745_p11 }
 0x2b8   : > { %p3743_p10 = pneg %p3742_p9 }
 0x2b9   : > { %p3749_p2 = por %p3748_p1, %p3747_p0 }
 0x2bb   : > { %p3750_p3 = pnand %p3749_p2, %p3743_p10 }
 0x2bd   : > { %3753 = shalt.err (!%p3750_p3)
}
 0x2be   : > { %s3807_s28 = smov 768   ;;  %s3808_s30 = smov 48  }
 0x2bf   : > { %2609 = dma.vmem_to_hbm [thread:$0]  (%p2990_p13), %s5489_s7, %s5477_s4, %s5487_s15, %s5472_s3, %s3807_s28, %s3807_s28, %s3808_s30  }
 0x2c0 PF: > { %p3643_p4 = scmp.ge.s32.totalorder %s3804_s14, 2  ;;  %s2618_s5 = sand.u32 1, %s3784_s9  }
 0x2c1   : > { %s2619_s6 = scalar_lea.sflag [#allocation3], %s2618_s5 }
 0x2c2   : > { %p3640_p5 = pnand %p3643_p4, %p3871_p8 }
 0x2c4   : > { %3779 = dma.done.wait (!%p3640_p5), %s2619_s6, 49152  }
 0x2c5   : > { %3781 = vsyncadd (!%p3640_p5), %s2619_s6, 4294918144  ;;  %s15_s14 = sadd.s32 1, %s3804_s14   ;;  %s5545_s9 = smov %s3788_s10 }
 0x2c6   : > { %p12_p6 = scmp.ge.s32.totalorder %s15_s14, 4   ;;  %s5546_s10 = smov %s3792_s11 }
 0x2c7   : > { %s5547_s11 = smov %s3877_s22  ;;  %s5548_s12 = smov %s3800_s13 }
 0x2c8   : > { %s5549_s13 = smov %s5551_s17  ;;  %14 = sbr.rel (!%p12_p6) target bundleno = 4 (0x4), region = 66 }
 0x2cf   :  { %2624 = vsyncpa [#allocation3], 1 }
 0x2d0   :  { %2626 = vsyncpa [#allocation3 + $0x1], 1 }

</bundles_post_ra>
